<compile_context>
chip_gen: v5e
topology: v5e:2x2
jax: 0.10.0
libtpu: 0.0.40
codegen_flags: <defaults>
</compile_context>

<pallas_src>
import functools

import jax
import jax.numpy as jnp
from jax.experimental import pallas as pl
from jax.experimental.pallas import tpu as pltpu


def _rssm_kernel(
    xcat_ref, deter_ref, mask_ref,
    w_in_ref, b_in_ref,
    wqkv_ref, bqkv_ref, wo_ref, bo_ref,
    wf1_ref, bf1_ref, wf2_ref, bf2_ref,
    w_ig_ref, b_ig_ref, w_hg_ref, b_hg_ref,
    wp1_ref, bp1_ref, wp2_ref, bp2_ref,
    out_ref,
    *, n_layers, hidden_size, deter_size, n_latent,
):
    f32 = jnp.float32
    H = hidden_size
    D = deter_size

    def mm(a, b):  # a @ b with f32 accumulation on the MXU
        return jax.lax.dot_general(a, b, (((1,), (0,)), ((), ())),
                                   preferred_element_type=f32)

    Bt, A_pad, din = xcat_ref.shape
    M = Bt * A_pad

    x = xcat_ref[...].reshape(M, din)          # (M, action+stoch)
    h_prev = deter_ref[...].reshape(M, D)      # (M, D)
    key_mask = mask_ref[...]                   # (Bt, 1, A_pad); 1=real, 0=pad
    neg_mask = (key_mask - 1.0) * 1e9          # hoisted once per grid step

    # ---- rnn input model: Linear -> Identity norm -> ReLU ----
    h = jnp.maximum(mm(x, w_in_ref[...]) + b_in_ref[...], 0.0)   # (M, H)
    scale = 1.0 / (float(H) ** 0.5)

    # ---- attention stack over the agent axis (n_layers, unrolled) ----
    for l in range(n_layers):
        qkv = mm(h, wqkv_ref[l]) + bqkv_ref[l]                   # fused (M, 3H)
        q = qkv[:, 0:H].reshape(Bt, A_pad, H)
        k = qkv[:, H:2 * H].reshape(Bt, A_pad, H)
        v = qkv[:, 2 * H:3 * H].reshape(Bt, A_pad, H)
        scores = jnp.einsum('bqd,bkd->bqk', q, k,
                            preferred_element_type=f32) * scale  # (Bt, A, A)
        scores = scores + neg_mask                               # mask pad keys
        scores = scores - jnp.max(scores, axis=-1, keepdims=True)
        e = jnp.exp(scores)
        inv = pl.reciprocal(jnp.sum(e, axis=-1, keepdims=True), approx=True)
        attn = e * inv
        o = jnp.einsum('bqk,bkd->bqd', attn, v,
                       preferred_element_type=f32).reshape(M, H)
        h = h + mm(o, wo_ref[l]) + bo_ref[l]                     # residual
        f = jnp.maximum(mm(h, wf1_ref[l]) + bf1_ref[l], 0.0)
        h = h + mm(f, wf2_ref[l]) + bf2_ref[l]                   # residual

    # ---- GRU cell, per-gate weights (PyTorch nn.GRU gate order: r, z, n) ----
    gi_r = mm(h, w_ig_ref[0]) + b_ig_ref[0]
    gi_z = mm(h, w_ig_ref[1]) + b_ig_ref[1]
    gi_n = mm(h, w_ig_ref[2]) + b_ig_ref[2]
    gh_r = mm(h_prev, w_hg_ref[0]) + b_hg_ref[0]
    gh_z = mm(h_prev, w_hg_ref[1]) + b_hg_ref[1]
    gh_n = mm(h_prev, w_hg_ref[2]) + b_hg_ref[2]
    r = jax.nn.sigmoid(gi_r + gh_r)
    z = jax.nn.sigmoid(gi_z + gh_z)
    n = jnp.tanh(gi_n + r * gh_n)
    h_new = (1.0 - z) * n + z * h_prev                           # (M, D)

    # ---- stochastic prior model: Linear -> ReLU -> Linear (logits) ----
    p1 = jnp.maximum(mm(h_new, wp1_ref[...]) + bp1_ref[...], 0.0)
    logits = mm(p1, wp2_ref[...]) + bp2_ref[...]                 # (M, ck)

    # single merged, wider store: [logits | deter]
    merged = jnp.concatenate([logits, h_new], axis=-1)           # (M, ck + D)
    out_ref[...] = merged.reshape(Bt, A_pad, n_latent + D).astype(out_ref.dtype)


_WEIGHT_ORDER = [
    "w_in", "b_in",
    "wqkv", "bqkv", "wo", "bo", "wf1", "bf1", "wf2", "bf2",
    "w_ig", "b_ig", "w_hg", "b_hg",
    "wp1", "bp1", "wp2", "bp2",
]


def _pack_params(params, deter_size):
    """Fuse QKV, split GRU gates into lane-aligned per-gate tiles."""
    D = deter_size
    p = params
    return {
        "w_in": p["w_in"], "b_in": p["b_in"],
        "wqkv": jnp.concatenate([p["wq"], p["wk"], p["wv"]], axis=-1),
        "bqkv": jnp.concatenate([p["bq"], p["bk"], p["bv"]], axis=-1),
        "wo": p["wo"], "bo": p["bo"],
        "wf1": p["wf1"], "bf1": p["bf1"],
        "wf2": p["wf2"], "bf2": p["bf2"],
        "w_ig": jnp.stack([p["w_iht"][:, i * D:(i + 1) * D] for i in range(3)]),
        "b_ig": jnp.stack([p["b_ih"][:, i * D:(i + 1) * D] for i in range(3)]),
        "w_hg": jnp.stack([p["w_hht"][:, i * D:(i + 1) * D] for i in range(3)]),
        "b_hg": jnp.stack([p["b_hh"][:, i * D:(i + 1) * D] for i in range(3)]),
        "wp1": p["wp1"], "bp1": p["bp1"],
        "wp2": p["wp2"], "bp2": p["bp2"],
    }


def rssm_transition_pallas(prev_actions, prev_stoch, prev_deter, params,
                           *, n_layers, deter_size, hidden_size,
                           n_categoricals, n_classes, batch_tile=None):
    B, A = prev_actions.shape[0], prev_actions.shape[1]
    xcat = jnp.concatenate([prev_actions, prev_stoch], axis=-1).astype(jnp.float32)
    din = xcat.shape[-1]
    ck = n_categoricals * n_classes

    # agent axis -> sublane multiple of 8; batch axis -> multiple of the tile
    A_pad = ((A + 7) // 8) * 8
    if batch_tile is None:
        # target Bt*A_pad >= 256 rows per MXU push without over-padding tiny B
        batch_tile = max(1, min(B, max(1, 256 // A_pad)))
    Bt = batch_tile
    n_steps = -(-B // Bt)
    B_pad = n_steps * Bt

    xcat_p = jnp.pad(xcat, ((0, B_pad - B), (0, A_pad - A), (0, 0)))
    deter_p = jnp.pad(prev_deter.astype(jnp.float32),
                      ((0, B_pad - B), (0, A_pad - A), (0, 0)))
    key_mask = jnp.pad(jnp.ones((B, 1, A), jnp.float32),
                       ((0, B_pad - B), (0, 0), (0, A_pad - A)))

    packed = _pack_params(params, deter_size)
    weights = [packed[k] for k in _WEIGHT_ORDER]

    def act_spec(feat):
        return pl.BlockSpec((Bt, A_pad, feat), lambda b: (b, 0, 0))

    def full_spec(arr):
        zeros = (0,) * arr.ndim
        return pl.BlockSpec(arr.shape, lambda b, zeros=zeros: zeros)

    in_specs = [act_spec(din), act_spec(deter_size),
                pl.BlockSpec((Bt, 1, A_pad), lambda b: (b, 0, 0))]
    in_specs += [full_spec(w) for w in weights]

    out_dim = ck + deter_size
    out_shape = jax.ShapeDtypeStruct((B_pad, A_pad, out_dim), jnp.float32)
    out_specs = pl.BlockSpec((Bt, A_pad, out_dim), lambda b: (b, 0, 0))

    kernel = functools.partial(_rssm_kernel, n_layers=n_layers,
                               hidden_size=hidden_size, deter_size=deter_size,
                               n_latent=ck)

    merged = pl.pallas_call(
        kernel,
        grid=(n_steps,),
        in_specs=in_specs,
        out_specs=out_specs,
        out_shape=out_shape,
        compiler_params=pltpu.CompilerParams(
            dimension_semantics=("parallel",)),
    )(xcat_p, deter_p, key_mask, *weights)

    logits = merged[:B, :A, :ck]
    deter_out = merged[:B, :A, ck:]
    return logits, deter_out


def init_params(key, *, action_size, stoch_size, deter_size, hidden_size,
                n_layers, n_categoricals, n_classes):
    """Deterministic synthetic parameter init (matches PyTorch module shapes)."""
    din = action_size + stoch_size
    ck = n_categoricals * n_classes
    keys = iter(jax.random.split(key, 64))

    def w(shape, s=0.1):
        return (s * jax.random.normal(next(keys), shape)).astype(jnp.float32)

    p = {}
    # _rnn_input_model: Linear(din, hidden) + Identity + ReLU
    p["w_in"] = w((din, hidden_size))
    p["b_in"] = w((1, hidden_size))
    # attention stack (stacked over layers)
    for name in ["wq", "wk", "wv", "wo", "wf1", "wf2"]:
        p[name] = w((n_layers, hidden_size, hidden_size))
    for name in ["bq", "bk", "bv", "bo", "bf1", "bf2"]:
        p[name] = w((n_layers, 1, hidden_size))
    # GRU(hidden_size -> deter_size); PyTorch stores (3*deter, in); stored transposed
    p["w_iht"] = w((hidden_size, 3 * deter_size))
    p["w_hht"] = w((deter_size, 3 * deter_size))
    p["b_ih"] = w((1, 3 * deter_size))
    p["b_hh"] = w((1, 3 * deter_size))
    # DiscreteLatentDist: Linear(deter, hidden) -> ReLU -> Linear(hidden, ck)
    p["wp1"] = w((deter_size, hidden_size))
    p["bp1"] = w((1, hidden_size))
    p["wp2"] = w((hidden_size, ck))
    p["bp2"] = w((1, ck))
    return p


def _reference_forward(prev_actions, prev_stoch, prev_deter, params,
                       *, n_layers, deter_size, hidden_size):
    """Pure-JAX reference of the same forward pass (unfused weights)."""
    D = deter_size
    H = hidden_size
    x = jnp.concatenate([prev_actions, prev_stoch], axis=-1).astype(jnp.float32)
    h = jnp.maximum(x @ params["w_in"] + params["b_in"], 0.0)
    scale = 1.0 / (H ** 0.5)
    for l in range(n_layers):
        q = h @ params["wq"][l] + params["bq"][l]
        k = h @ params["wk"][l] + params["bk"][l]
        v = h @ params["wv"][l] + params["bv"][l]
        scores = jnp.einsum('bqd,bkd->bqk', q, k) * scale
        attn = jax.nn.softmax(scores, axis=-1)
        o = jnp.einsum('bqk,bkd->bqd', attn, v) @ params["wo"][l] + params["bo"][l]
        h = h + o
        f = jnp.maximum(h @ params["wf1"][l] + params["bf1"][l], 0.0)
        h = h + f @ params["wf2"][l] + params["bf2"][l]
    gi = h @ params["w_iht"] + params["b_ih"]
    gh = prev_deter.astype(jnp.float32) @ params["w_hht"] + params["b_hh"]
    r = jax.nn.sigmoid(gi[..., 0:D] + gh[..., 0:D])
    z = jax.nn.sigmoid(gi[..., D:2 * D] + gh[..., D:2 * D])
    n = jnp.tanh(gi[..., 2 * D:3 * D] + r * gh[..., 2 * D:3 * D])
    h_new = (1.0 - z) * n + z * prev_deter.astype(jnp.float32)
    p1 = jnp.maximum(h_new @ params["wp1"] + params["bp1"], 0.0)
    logits = p1 @ params["wp2"] + params["bp2"]
    return logits, h_new


if __name__ == "__main__":
    # small, module-consistent config
    B, A = 6, 3                 # batch, n_agents
    ACTION_SIZE = 5
    N_CATEGORICALS, N_CLASSES = 4, 4
    STOCH = N_CATEGORICALS * N_CLASSES   # config.STOCHASTIC
    DETER = 32                           # config.DETERMINISTIC
    HIDDEN = 32                          # hidden_size
    N_LAYERS = 3

    root = jax.random.PRNGKey(0)
    k_par, k_act, k_sto, k_det, k_sample = jax.random.split(root, 5)

    params = init_params(k_par, action_size=ACTION_SIZE, stoch_size=STOCH,
                         deter_size=DETER, hidden_size=HIDDEN,
                         n_layers=N_LAYERS, n_categoricals=N_CATEGORICALS,
                         n_classes=N_CLASSES)

    prev_actions = jax.random.normal(k_act, (B, A, ACTION_SIZE), jnp.float32)
    prev_stoch = jax.random.normal(k_sto, (B, A, STOCH), jnp.float32)
    prev_deter = jax.random.normal(k_det, (B, A, DETER), jnp.float32)

    # batch_tile=4 -> grid of 2 steps, exercises batch padding + multi-step grid
    logits, deter_out = rssm_transition_pallas(
        prev_actions, prev_stoch, prev_deter, params,
        n_layers=N_LAYERS, deter_size=DETER, hidden_size=HIDDEN,
        n_categoricals=N_CATEGORICALS, n_classes=N_CLASSES, batch_tile=4)
    jax.block_until_ready((logits, deter_out))

    # pure-JAX reference (loose tolerance: approx reciprocal in the softmax)
    ref_logits, ref_deter = _reference_forward(
        prev_actions, prev_stoch, prev_deter, params,
        n_layers=N_LAYERS, deter_size=DETER, hidden_size=HIDDEN)
    err_logits = float(jnp.max(jnp.abs(logits - ref_logits)))
    err_deter = float(jnp.max(jnp.abs(deter_out - ref_deter)))
    assert err_logits < 2e-2 and err_deter < 2e-2, (err_logits, err_deter)

    # --- DiscreteLatentDist sampling / straight-through (plain JAX glue) ---
    logits4 = logits.reshape(B, A, N_CATEGORICALS, N_CLASSES)
    probs = jax.nn.softmax(logits4, axis=-1)
    sample_idx = jax.random.categorical(k_sample, logits4, axis=-1)
    one_hot = jax.nn.one_hot(sample_idx, N_CLASSES, dtype=jnp.float32)
    latents = one_hot + probs - jax.lax.stop_gradient(probs)
    stoch_state = latents.reshape(B, A, N_CATEGORICALS * N_CLASSES)

    # RSSMState(logits=logits, stoch=stoch_state, deter=deter_out)
    rssm_state = {"logits": logits, "stoch": stoch_state, "deter": deter_out}
    jax.block_until_ready(rssm_state)

    assert rssm_state["logits"].shape == (B, A, N_CATEGORICALS * N_CLASSES)
    assert rssm_state["stoch"].shape == (B, A, N_CATEGORICALS * N_CLASSES)
    assert rssm_state["deter"].shape == (B, A, DETER)
    print("KERNEL_OK")
</pallas_src>

<mosaic_0001>
module attributes {stable_mosaic.version = 11 : i64} {
  func.func @_rssm_kernel(%arg0: i32, %arg1: memref<4x8x21xf32, #tpu.memory_space<vmem>>, %arg2: memref<4x8x32xf32, #tpu.memory_space<vmem>>, %arg3: memref<4x1x8xf32, #tpu.memory_space<vmem>>, %arg4: memref<21x32xf32, #tpu.memory_space<vmem>>, %arg5: memref<1x32xf32, #tpu.memory_space<vmem>>, %arg6: memref<3x32x96xf32, #tpu.memory_space<vmem>>, %arg7: memref<3x1x96xf32, #tpu.memory_space<vmem>>, %arg8: memref<3x32x32xf32, #tpu.memory_space<vmem>>, %arg9: memref<3x1x32xf32, #tpu.memory_space<vmem>>, %arg10: memref<3x32x32xf32, #tpu.memory_space<vmem>>, %arg11: memref<3x1x32xf32, #tpu.memory_space<vmem>>, %arg12: memref<3x32x32xf32, #tpu.memory_space<vmem>>, %arg13: memref<3x1x32xf32, #tpu.memory_space<vmem>>, %arg14: memref<3x32x32xf32, #tpu.memory_space<vmem>>, %arg15: memref<3x1x32xf32, #tpu.memory_space<vmem>>, %arg16: memref<3x32x32xf32, #tpu.memory_space<vmem>>, %arg17: memref<3x1x32xf32, #tpu.memory_space<vmem>>, %arg18: memref<32x32xf32, #tpu.memory_space<vmem>>, %arg19: memref<1x32xf32, #tpu.memory_space<vmem>>, %arg20: memref<32x16xf32, #tpu.memory_space<vmem>>, %arg21: memref<1x16xf32, #tpu.memory_space<vmem>>, %arg22: memref<4x8x48xf32, #tpu.memory_space<vmem>>) attributes {dimension_semantics = [#tpu.dimension_semantics<parallel>], iteration_bounds = array<i64: 2>, scalar_prefetch = 0 : i64, scratch_operands = 0 : i64, tpu.core_type = #tpu.core_type<tc>, window_params = [{transform_indices = @transform_0, window_bounds = array<i64: 4, 8, 21>}, {transform_indices = @transform_1, window_bounds = array<i64: 4, 8, 32>}, {transform_indices = @transform_2, window_bounds = array<i64: 4, 1, 8>}, {pipeline_mode = #tpu.pipeline_mode<synchronous>, transform_indices = @transform_3, window_bounds = array<i64: 21, 32>}, {pipeline_mode = #tpu.pipeline_mode<synchronous>, transform_indices = @transform_4, window_bounds = array<i64: 1, 32>}, {pipeline_mode = #tpu.pipeline_mode<synchronous>, transform_indices = @transform_5, window_bounds = array<i64: 3, 32, 96>}, {pipeline_mode = #tpu.pipeline_mode<synchronous>, transform_indices = @transform_6, window_bounds = array<i64: 3, 1, 96>}, {pipeline_mode = #tpu.pipeline_mode<synchronous>, transform_indices = @transform_7, window_bounds = array<i64: 3, 32, 32>}, {pipeline_mode = #tpu.pipeline_mode<synchronous>, transform_indices = @transform_8, window_bounds = array<i64: 3, 1, 32>}, {pipeline_mode = #tpu.pipeline_mode<synchronous>, transform_indices = @transform_9, window_bounds = array<i64: 3, 32, 32>}, {pipeline_mode = #tpu.pipeline_mode<synchronous>, transform_indices = @transform_10, window_bounds = array<i64: 3, 1, 32>}, {pipeline_mode = #tpu.pipeline_mode<synchronous>, transform_indices = @transform_11, window_bounds = array<i64: 3, 32, 32>}, {pipeline_mode = #tpu.pipeline_mode<synchronous>, transform_indices = @transform_12, window_bounds = array<i64: 3, 1, 32>}, {pipeline_mode = #tpu.pipeline_mode<synchronous>, transform_indices = @transform_13, window_bounds = array<i64: 3, 32, 32>}, {pipeline_mode = #tpu.pipeline_mode<synchronous>, transform_indices = @transform_14, window_bounds = array<i64: 3, 1, 32>}, {pipeline_mode = #tpu.pipeline_mode<synchronous>, transform_indices = @transform_15, window_bounds = array<i64: 3, 32, 32>}, {pipeline_mode = #tpu.pipeline_mode<synchronous>, transform_indices = @transform_16, window_bounds = array<i64: 3, 1, 32>}, {pipeline_mode = #tpu.pipeline_mode<synchronous>, transform_indices = @transform_17, window_bounds = array<i64: 32, 32>}, {pipeline_mode = #tpu.pipeline_mode<synchronous>, transform_indices = @transform_18, window_bounds = array<i64: 1, 32>}, {pipeline_mode = #tpu.pipeline_mode<synchronous>, transform_indices = @transform_19, window_bounds = array<i64: 32, 16>}, {pipeline_mode = #tpu.pipeline_mode<synchronous>, transform_indices = @transform_20, window_bounds = array<i64: 1, 16>}, {transform_indices = @transform_21, window_bounds = array<i64: 4, 8, 48>}]} {
    %c0 = arith.constant 0 : index
    %c0_0 = arith.constant 0 : index
    %c0_1 = arith.constant 0 : index
    %0 = vector.load %arg1[%c0, %c0_0, %c0_1] : memref<4x8x21xf32, #tpu.memory_space<vmem>>, vector<4x8x21xf32>
    %1 = vector.shape_cast %0 : vector<4x8x21xf32> to vector<32x21xf32>
    %c0_2 = arith.constant 0 : index
    %c0_3 = arith.constant 0 : index
    %c0_4 = arith.constant 0 : index
    %2 = vector.load %arg2[%c0_2, %c0_3, %c0_4] : memref<4x8x32xf32, #tpu.memory_space<vmem>>, vector<4x8x32xf32>
    %3 = vector.shape_cast %2 : vector<4x8x32xf32> to vector<32x32xf32>
    %c0_5 = arith.constant 0 : index
    %c0_6 = arith.constant 0 : index
    %c0_7 = arith.constant 0 : index
    %4 = vector.load %arg3[%c0_5, %c0_6, %c0_7] : memref<4x1x8xf32, #tpu.memory_space<vmem>>, vector<4x1x8xf32>
    %cst = arith.constant 1.000000e+00 : f32
    %5 = vector.broadcast %cst : f32 to vector<4x1x8xf32>
    %6 = arith.subf %4, %5 : vector<4x1x8xf32>
    %cst_8 = arith.constant 1.000000e+09 : f32
    %7 = vector.broadcast %cst_8 : f32 to vector<4x1x8xf32>
    %8 = arith.mulf %6, %7 : vector<4x1x8xf32>
    %c0_9 = arith.constant 0 : index
    %c0_10 = arith.constant 0 : index
    %9 = vector.load %arg4[%c0_9, %c0_10] : memref<21x32xf32, #tpu.memory_space<vmem>>, vector<21x32xf32>
    %cst_11 = arith.constant dense<0.000000e+00> : vector<32x32xf32>
    %10 = tpu.matmul %1, %9, %cst_11 {dimension_numbers = #tpu.dot_dimension_numbers<[1], [0], [0], [1], [0, 0, 1, 1], [], []>} : vector<32x21xf32>, vector<21x32xf32>, vector<32x32xf32> -> vector<32x32xf32>
    %c0_12 = arith.constant 0 : index
    %c0_13 = arith.constant 0 : index
    %11 = vector.load %arg5[%c0_12, %c0_13] : memref<1x32xf32, #tpu.memory_space<vmem>>, vector<1x32xf32>
    %12 = vector.broadcast %11 : vector<1x32xf32> to vector<32x32xf32>
    %13 = arith.addf %10, %12 : vector<32x32xf32>
    %cst_14 = arith.constant 0.000000e+00 : f32
    %14 = vector.broadcast %cst_14 : f32 to vector<32x32xf32>
    %15 = arith.maximumf %13, %14 : vector<32x32xf32>
    %c0_15 = arith.constant 0 : index
    %c0_16 = arith.constant 0 : index
    %c0_17 = arith.constant 0 : index
    %16 = vector.load %arg6[%c0_15, %c0_16, %c0_17] : memref<3x32x96xf32, #tpu.memory_space<vmem>>, vector<1x32x96xf32>
    %17 = vector.shape_cast %16 : vector<1x32x96xf32> to vector<32x96xf32>
    %cst_18 = arith.constant dense<0.000000e+00> : vector<32x96xf32>
    %18 = tpu.matmul %15, %17, %cst_18 {dimension_numbers = #tpu.dot_dimension_numbers<[1], [0], [0], [1], [0, 0, 1, 1], [], []>} : vector<32x32xf32>, vector<32x96xf32>, vector<32x96xf32> -> vector<32x96xf32>
    %c0_19 = arith.constant 0 : index
    %c0_20 = arith.constant 0 : index
    %c0_21 = arith.constant 0 : index
    %19 = vector.load %arg7[%c0_19, %c0_20, %c0_21] : memref<3x1x96xf32, #tpu.memory_space<vmem>>, vector<1x1x96xf32>
    %20 = vector.shape_cast %19 : vector<1x1x96xf32> to vector<1x96xf32>
    %21 = vector.broadcast %20 : vector<1x96xf32> to vector<32x96xf32>
    %22 = arith.addf %18, %21 : vector<32x96xf32>
    %23 = vector.extract_strided_slice %22 {offsets = [0, 0], sizes = [32, 32], strides = [1, 1]} : vector<32x96xf32> to vector<32x32xf32>
    %24 = vector.shape_cast %23 : vector<32x32xf32> to vector<4x8x32xf32>
    %25 = vector.extract_strided_slice %22 {offsets = [0, 32], sizes = [32, 32], strides = [1, 1]} : vector<32x96xf32> to vector<32x32xf32>
    %26 = vector.shape_cast %25 : vector<32x32xf32> to vector<4x8x32xf32>
    %27 = vector.extract_strided_slice %22 {offsets = [0, 64], sizes = [32, 32], strides = [1, 1]} : vector<32x96xf32> to vector<32x32xf32>
    %28 = vector.shape_cast %27 : vector<32x32xf32> to vector<4x8x32xf32>
    "tpu.trace_start"() <{level = 10 : i32, message = "bqd,bkd->bqk"}> : () -> ()
    %cst_22 = arith.constant dense<0.000000e+00> : vector<4x8x8xf32>
    %29 = tpu.matmul %24, %26, %cst_22 {dimension_numbers = #tpu.dot_dimension_numbers<[2], [2], [1], [1], [0, 0, 0, 1, 1, 1], [0], [0]>} : vector<4x8x32xf32>, vector<4x8x32xf32>, vector<4x8x8xf32> -> vector<4x8x8xf32>
    "tpu.trace_stop"() : () -> ()
    %cst_23 = arith.constant 0.176776692 : f32
    %30 = vector.broadcast %cst_23 : f32 to vector<4x8x8xf32>
    %31 = arith.mulf %29, %30 : vector<4x8x8xf32>
    %32 = vector.broadcast %8 : vector<4x1x8xf32> to vector<4x8x8xf32>
    %33 = arith.addf %31, %32 : vector<4x8x8xf32>
    %cst_24 = arith.constant dense<0xFF800000> : vector<4x8xf32>
    %34 = vector.multi_reduction <maximumf>, %33, %cst_24 [2] : vector<4x8x8xf32> to vector<4x8xf32>
    %35 = vector.shape_cast %34 : vector<4x8xf32> to vector<4x8x1xf32>
    %36 = vector.broadcast %35 : vector<4x8x1xf32> to vector<4x8x8xf32>
    %37 = arith.subf %33, %36 : vector<4x8x8xf32>
    %38 = math.exp %37 : vector<4x8x8xf32>
    %cst_25 = arith.constant dense<0.000000e+00> : vector<4x8xf32>
    %39 = vector.multi_reduction <add>, %38, %cst_25 [2] : vector<4x8x8xf32> to vector<4x8xf32>
    %40 = vector.shape_cast %39 : vector<4x8xf32> to vector<4x8x1xf32>
    %41 = tpu.reciprocal %40 {approx = true} : vector<4x8x1xf32> -> vector<4x8x1xf32>
    %42 = vector.broadcast %41 : vector<4x8x1xf32> to vector<4x8x8xf32>
    %43 = arith.mulf %38, %42 : vector<4x8x8xf32>
    "tpu.trace_start"() <{level = 10 : i32, message = "bqk,bkd->bqd"}> : () -> ()
    %cst_26 = arith.constant dense<0.000000e+00> : vector<4x8x32xf32>
    %44 = tpu.matmul %43, %28, %cst_26 {dimension_numbers = #tpu.dot_dimension_numbers<[2], [1], [1], [2], [0, 0, 0, 1, 1, 2], [0], [0]>} : vector<4x8x8xf32>, vector<4x8x32xf32>, vector<4x8x32xf32> -> vector<4x8x32xf32>
    "tpu.trace_stop"() : () -> ()
    %45 = vector.shape_cast %44 : vector<4x8x32xf32> to vector<32x32xf32>
    %c0_27 = arith.constant 0 : index
    %c0_28 = arith.constant 0 : index
    %c0_29 = arith.constant 0 : index
    %46 = vector.load %arg8[%c0_27, %c0_28, %c0_29] : memref<3x32x32xf32, #tpu.memory_space<vmem>>, vector<1x32x32xf32>
    %47 = vector.shape_cast %46 : vector<1x32x32xf32> to vector<32x32xf32>
    %cst_30 = arith.constant dense<0.000000e+00> : vector<32x32xf32>
    %48 = tpu.matmul %45, %47, %cst_30 {dimension_numbers = #tpu.dot_dimension_numbers<[1], [0], [0], [1], [0, 0, 1, 1], [], []>} : vector<32x32xf32>, vector<32x32xf32>, vector<32x32xf32> -> vector<32x32xf32>
    %49 = arith.addf %15, %48 : vector<32x32xf32>
    %c0_31 = arith.constant 0 : index
    %c0_32 = arith.constant 0 : index
    %c0_33 = arith.constant 0 : index
    %50 = vector.load %arg9[%c0_31, %c0_32, %c0_33] : memref<3x1x32xf32, #tpu.memory_space<vmem>>, vector<1x1x32xf32>
    %51 = vector.shape_cast %50 : vector<1x1x32xf32> to vector<1x32xf32>
    %52 = vector.broadcast %51 : vector<1x32xf32> to vector<32x32xf32>
    %53 = arith.addf %49, %52 : vector<32x32xf32>
    %c0_34 = arith.constant 0 : index
    %c0_35 = arith.constant 0 : index
    %c0_36 = arith.constant 0 : index
    %54 = vector.load %arg10[%c0_34, %c0_35, %c0_36] : memref<3x32x32xf32, #tpu.memory_space<vmem>>, vector<1x32x32xf32>
    %55 = vector.shape_cast %54 : vector<1x32x32xf32> to vector<32x32xf32>
    %cst_37 = arith.constant dense<0.000000e+00> : vector<32x32xf32>
    %56 = tpu.matmul %53, %55, %cst_37 {dimension_numbers = #tpu.dot_dimension_numbers<[1], [0], [0], [1], [0, 0, 1, 1], [], []>} : vector<32x32xf32>, vector<32x32xf32>, vector<32x32xf32> -> vector<32x32xf32>
    %c0_38 = arith.constant 0 : index
    %c0_39 = arith.constant 0 : index
    %c0_40 = arith.constant 0 : index
    %57 = vector.load %arg11[%c0_38, %c0_39, %c0_40] : memref<3x1x32xf32, #tpu.memory_space<vmem>>, vector<1x1x32xf32>
    %58 = vector.shape_cast %57 : vector<1x1x32xf32> to vector<1x32xf32>
    %59 = vector.broadcast %58 : vector<1x32xf32> to vector<32x32xf32>
    %60 = arith.addf %56, %59 : vector<32x32xf32>
    %cst_41 = arith.constant 0.000000e+00 : f32
    %61 = vector.broadcast %cst_41 : f32 to vector<32x32xf32>
    %62 = arith.maximumf %60, %61 : vector<32x32xf32>
    %c0_42 = arith.constant 0 : index
    %c0_43 = arith.constant 0 : index
    %c0_44 = arith.constant 0 : index
    %63 = vector.load %arg12[%c0_42, %c0_43, %c0_44] : memref<3x32x32xf32, #tpu.memory_space<vmem>>, vector<1x32x32xf32>
    %64 = vector.shape_cast %63 : vector<1x32x32xf32> to vector<32x32xf32>
    %cst_45 = arith.constant dense<0.000000e+00> : vector<32x32xf32>
    %65 = tpu.matmul %62, %64, %cst_45 {dimension_numbers = #tpu.dot_dimension_numbers<[1], [0], [0], [1], [0, 0, 1, 1], [], []>} : vector<32x32xf32>, vector<32x32xf32>, vector<32x32xf32> -> vector<32x32xf32>
    %66 = arith.addf %53, %65 : vector<32x32xf32>
    %c0_46 = arith.constant 0 : index
    %c0_47 = arith.constant 0 : index
    %c0_48 = arith.constant 0 : index
    %67 = vector.load %arg13[%c0_46, %c0_47, %c0_48] : memref<3x1x32xf32, #tpu.memory_space<vmem>>, vector<1x1x32xf32>
    %68 = vector.shape_cast %67 : vector<1x1x32xf32> to vector<1x32xf32>
    %69 = vector.broadcast %68 : vector<1x32xf32> to vector<32x32xf32>
    %70 = arith.addf %66, %69 : vector<32x32xf32>
    %c1 = arith.constant 1 : index
    %c0_49 = arith.constant 0 : index
    %c0_50 = arith.constant 0 : index
    %71 = vector.load %arg6[%c1, %c0_49, %c0_50] : memref<3x32x96xf32, #tpu.memory_space<vmem>>, vector<1x32x96xf32>
    %72 = vector.shape_cast %71 : vector<1x32x96xf32> to vector<32x96xf32>
    %cst_51 = arith.constant dense<0.000000e+00> : vector<32x96xf32>
    %73 = tpu.matmul %70, %72, %cst_51 {dimension_numbers = #tpu.dot_dimension_numbers<[1], [0], [0], [1], [0, 0, 1, 1], [], []>} : vector<32x32xf32>, vector<32x96xf32>, vector<32x96xf32> -> vector<32x96xf32>
    %c1_52 = arith.constant 1 : index
    %c0_53 = arith.constant 0 : index
    %c0_54 = arith.constant 0 : index
    %74 = vector.load %arg7[%c1_52, %c0_53, %c0_54] : memref<3x1x96xf32, #tpu.memory_space<vmem>>, vector<1x1x96xf32>
    %75 = vector.shape_cast %74 : vector<1x1x96xf32> to vector<1x96xf32>
    %76 = vector.broadcast %75 : vector<1x96xf32> to vector<32x96xf32>
    %77 = arith.addf %73, %76 : vector<32x96xf32>
    %78 = vector.extract_strided_slice %77 {offsets = [0, 0], sizes = [32, 32], strides = [1, 1]} : vector<32x96xf32> to vector<32x32xf32>
    %79 = vector.shape_cast %78 : vector<32x32xf32> to vector<4x8x32xf32>
    %80 = vector.extract_strided_slice %77 {offsets = [0, 32], sizes = [32, 32], strides = [1, 1]} : vector<32x96xf32> to vector<32x32xf32>
    %81 = vector.shape_cast %80 : vector<32x32xf32> to vector<4x8x32xf32>
    %82 = vector.extract_strided_slice %77 {offsets = [0, 64], sizes = [32, 32], strides = [1, 1]} : vector<32x96xf32> to vector<32x32xf32>
    %83 = vector.shape_cast %82 : vector<32x32xf32> to vector<4x8x32xf32>
    "tpu.trace_start"() <{level = 10 : i32, message = "bqd,bkd->bqk"}> : () -> ()
    %cst_55 = arith.constant dense<0.000000e+00> : vector<4x8x8xf32>
    %84 = tpu.matmul %79, %81, %cst_55 {dimension_numbers = #tpu.dot_dimension_numbers<[2], [2], [1], [1], [0, 0, 0, 1, 1, 1], [0], [0]>} : vector<4x8x32xf32>, vector<4x8x32xf32>, vector<4x8x8xf32> -> vector<4x8x8xf32>
    "tpu.trace_stop"() : () -> ()
    %cst_56 = arith.constant 0.176776692 : f32
    %85 = vector.broadcast %cst_56 : f32 to vector<4x8x8xf32>
    %86 = arith.mulf %84, %85 : vector<4x8x8xf32>
    %87 = vector.broadcast %8 : vector<4x1x8xf32> to vector<4x8x8xf32>
    %88 = arith.addf %86, %87 : vector<4x8x8xf32>
    %cst_57 = arith.constant dense<0xFF800000> : vector<4x8xf32>
    %89 = vector.multi_reduction <maximumf>, %88, %cst_57 [2] : vector<4x8x8xf32> to vector<4x8xf32>
    %90 = vector.shape_cast %89 : vector<4x8xf32> to vector<4x8x1xf32>
    %91 = vector.broadcast %90 : vector<4x8x1xf32> to vector<4x8x8xf32>
    %92 = arith.subf %88, %91 : vector<4x8x8xf32>
    %93 = math.exp %92 : vector<4x8x8xf32>
    %cst_58 = arith.constant dense<0.000000e+00> : vector<4x8xf32>
    %94 = vector.multi_reduction <add>, %93, %cst_58 [2] : vector<4x8x8xf32> to vector<4x8xf32>
    %95 = vector.shape_cast %94 : vector<4x8xf32> to vector<4x8x1xf32>
    %96 = tpu.reciprocal %95 {approx = true} : vector<4x8x1xf32> -> vector<4x8x1xf32>
    %97 = vector.broadcast %96 : vector<4x8x1xf32> to vector<4x8x8xf32>
    %98 = arith.mulf %93, %97 : vector<4x8x8xf32>
    "tpu.trace_start"() <{level = 10 : i32, message = "bqk,bkd->bqd"}> : () -> ()
    %cst_59 = arith.constant dense<0.000000e+00> : vector<4x8x32xf32>
    %99 = tpu.matmul %98, %83, %cst_59 {dimension_numbers = #tpu.dot_dimension_numbers<[2], [1], [1], [2], [0, 0, 0, 1, 1, 2], [0], [0]>} : vector<4x8x8xf32>, vector<4x8x32xf32>, vector<4x8x32xf32> -> vector<4x8x32xf32>
    "tpu.trace_stop"() : () -> ()
    %100 = vector.shape_cast %99 : vector<4x8x32xf32> to vector<32x32xf32>
    %c1_60 = arith.constant 1 : index
    %c0_61 = arith.constant 0 : index
    %c0_62 = arith.constant 0 : index
    %101 = vector.load %arg8[%c1_60, %c0_61, %c0_62] : memref<3x32x32xf32, #tpu.memory_space<vmem>>, vector<1x32x32xf32>
    %102 = vector.shape_cast %101 : vector<1x32x32xf32> to vector<32x32xf32>
    %cst_63 = arith.constant dense<0.000000e+00> : vector<32x32xf32>
    %103 = tpu.matmul %100, %102, %cst_63 {dimension_numbers = #tpu.dot_dimension_numbers<[1], [0], [0], [1], [0, 0, 1, 1], [], []>} : vector<32x32xf32>, vector<32x32xf32>, vector<32x32xf32> -> vector<32x32xf32>
    %104 = arith.addf %70, %103 : vector<32x32xf32>
    %c1_64 = arith.constant 1 : index
    %c0_65 = arith.constant 0 : index
    %c0_66 = arith.constant 0 : index
    %105 = vector.load %arg9[%c1_64, %c0_65, %c0_66] : memref<3x1x32xf32, #tpu.memory_space<vmem>>, vector<1x1x32xf32>
    %106 = vector.shape_cast %105 : vector<1x1x32xf32> to vector<1x32xf32>
    %107 = vector.broadcast %106 : vector<1x32xf32> to vector<32x32xf32>
    %108 = arith.addf %104, %107 : vector<32x32xf32>
    %c1_67 = arith.constant 1 : index
    %c0_68 = arith.constant 0 : index
    %c0_69 = arith.constant 0 : index
    %109 = vector.load %arg10[%c1_67, %c0_68, %c0_69] : memref<3x32x32xf32, #tpu.memory_space<vmem>>, vector<1x32x32xf32>
    %110 = vector.shape_cast %109 : vector<1x32x32xf32> to vector<32x32xf32>
    %cst_70 = arith.constant dense<0.000000e+00> : vector<32x32xf32>
    %111 = tpu.matmul %108, %110, %cst_70 {dimension_numbers = #tpu.dot_dimension_numbers<[1], [0], [0], [1], [0, 0, 1, 1], [], []>} : vector<32x32xf32>, vector<32x32xf32>, vector<32x32xf32> -> vector<32x32xf32>
    %c1_71 = arith.constant 1 : index
    %c0_72 = arith.constant 0 : index
    %c0_73 = arith.constant 0 : index
    %112 = vector.load %arg11[%c1_71, %c0_72, %c0_73] : memref<3x1x32xf32, #tpu.memory_space<vmem>>, vector<1x1x32xf32>
    %113 = vector.shape_cast %112 : vector<1x1x32xf32> to vector<1x32xf32>
    %114 = vector.broadcast %113 : vector<1x32xf32> to vector<32x32xf32>
    %115 = arith.addf %111, %114 : vector<32x32xf32>
    %cst_74 = arith.constant 0.000000e+00 : f32
    %116 = vector.broadcast %cst_74 : f32 to vector<32x32xf32>
    %117 = arith.maximumf %115, %116 : vector<32x32xf32>
    %c1_75 = arith.constant 1 : index
    %c0_76 = arith.constant 0 : index
    %c0_77 = arith.constant 0 : index
    %118 = vector.load %arg12[%c1_75, %c0_76, %c0_77] : memref<3x32x32xf32, #tpu.memory_space<vmem>>, vector<1x32x32xf32>
    %119 = vector.shape_cast %118 : vector<1x32x32xf32> to vector<32x32xf32>
    %cst_78 = arith.constant dense<0.000000e+00> : vector<32x32xf32>
    %120 = tpu.matmul %117, %119, %cst_78 {dimension_numbers = #tpu.dot_dimension_numbers<[1], [0], [0], [1], [0, 0, 1, 1], [], []>} : vector<32x32xf32>, vector<32x32xf32>, vector<32x32xf32> -> vector<32x32xf32>
    %121 = arith.addf %108, %120 : vector<32x32xf32>
    %c1_79 = arith.constant 1 : index
    %c0_80 = arith.constant 0 : index
    %c0_81 = arith.constant 0 : index
    %122 = vector.load %arg13[%c1_79, %c0_80, %c0_81] : memref<3x1x32xf32, #tpu.memory_space<vmem>>, vector<1x1x32xf32>
    %123 = vector.shape_cast %122 : vector<1x1x32xf32> to vector<1x32xf32>
    %124 = vector.broadcast %123 : vector<1x32xf32> to vector<32x32xf32>
    %125 = arith.addf %121, %124 : vector<32x32xf32>
    %c2 = arith.constant 2 : index
    %c0_82 = arith.constant 0 : index
    %c0_83 = arith.constant 0 : index
    %126 = vector.load %arg6[%c2, %c0_82, %c0_83] : memref<3x32x96xf32, #tpu.memory_space<vmem>>, vector<1x32x96xf32>
    %127 = vector.shape_cast %126 : vector<1x32x96xf32> to vector<32x96xf32>
    %cst_84 = arith.constant dense<0.000000e+00> : vector<32x96xf32>
    %128 = tpu.matmul %125, %127, %cst_84 {dimension_numbers = #tpu.dot_dimension_numbers<[1], [0], [0], [1], [0, 0, 1, 1], [], []>} : vector<32x32xf32>, vector<32x96xf32>, vector<32x96xf32> -> vector<32x96xf32>
    %c2_85 = arith.constant 2 : index
    %c0_86 = arith.constant 0 : index
    %c0_87 = arith.constant 0 : index
    %129 = vector.load %arg7[%c2_85, %c0_86, %c0_87] : memref<3x1x96xf32, #tpu.memory_space<vmem>>, vector<1x1x96xf32>
    %130 = vector.shape_cast %129 : vector<1x1x96xf32> to vector<1x96xf32>
    %131 = vector.broadcast %130 : vector<1x96xf32> to vector<32x96xf32>
    %132 = arith.addf %128, %131 : vector<32x96xf32>
    %133 = vector.extract_strided_slice %132 {offsets = [0, 0], sizes = [32, 32], strides = [1, 1]} : vector<32x96xf32> to vector<32x32xf32>
    %134 = vector.shape_cast %133 : vector<32x32xf32> to vector<4x8x32xf32>
    %135 = vector.extract_strided_slice %132 {offsets = [0, 32], sizes = [32, 32], strides = [1, 1]} : vector<32x96xf32> to vector<32x32xf32>
    %136 = vector.shape_cast %135 : vector<32x32xf32> to vector<4x8x32xf32>
    %137 = vector.extract_strided_slice %132 {offsets = [0, 64], sizes = [32, 32], strides = [1, 1]} : vector<32x96xf32> to vector<32x32xf32>
    %138 = vector.shape_cast %137 : vector<32x32xf32> to vector<4x8x32xf32>
    "tpu.trace_start"() <{level = 10 : i32, message = "bqd,bkd->bqk"}> : () -> ()
    %cst_88 = arith.constant dense<0.000000e+00> : vector<4x8x8xf32>
    %139 = tpu.matmul %134, %136, %cst_88 {dimension_numbers = #tpu.dot_dimension_numbers<[2], [2], [1], [1], [0, 0, 0, 1, 1, 1], [0], [0]>} : vector<4x8x32xf32>, vector<4x8x32xf32>, vector<4x8x8xf32> -> vector<4x8x8xf32>
    "tpu.trace_stop"() : () -> ()
    %cst_89 = arith.constant 0.176776692 : f32
    %140 = vector.broadcast %cst_89 : f32 to vector<4x8x8xf32>
    %141 = arith.mulf %139, %140 : vector<4x8x8xf32>
    %142 = vector.broadcast %8 : vector<4x1x8xf32> to vector<4x8x8xf32>
    %143 = arith.addf %141, %142 : vector<4x8x8xf32>
    %cst_90 = arith.constant dense<0xFF800000> : vector<4x8xf32>
    %144 = vector.multi_reduction <maximumf>, %143, %cst_90 [2] : vector<4x8x8xf32> to vector<4x8xf32>
    %145 = vector.shape_cast %144 : vector<4x8xf32> to vector<4x8x1xf32>
    %146 = vector.broadcast %145 : vector<4x8x1xf32> to vector<4x8x8xf32>
    %147 = arith.subf %143, %146 : vector<4x8x8xf32>
    %148 = math.exp %147 : vector<4x8x8xf32>
    %cst_91 = arith.constant dense<0.000000e+00> : vector<4x8xf32>
    %149 = vector.multi_reduction <add>, %148, %cst_91 [2] : vector<4x8x8xf32> to vector<4x8xf32>
    %150 = vector.shape_cast %149 : vector<4x8xf32> to vector<4x8x1xf32>
    %151 = tpu.reciprocal %150 {approx = true} : vector<4x8x1xf32> -> vector<4x8x1xf32>
    %152 = vector.broadcast %151 : vector<4x8x1xf32> to vector<4x8x8xf32>
    %153 = arith.mulf %148, %152 : vector<4x8x8xf32>
    "tpu.trace_start"() <{level = 10 : i32, message = "bqk,bkd->bqd"}> : () -> ()
    %cst_92 = arith.constant dense<0.000000e+00> : vector<4x8x32xf32>
    %154 = tpu.matmul %153, %138, %cst_92 {dimension_numbers = #tpu.dot_dimension_numbers<[2], [1], [1], [2], [0, 0, 0, 1, 1, 2], [0], [0]>} : vector<4x8x8xf32>, vector<4x8x32xf32>, vector<4x8x32xf32> -> vector<4x8x32xf32>
    "tpu.trace_stop"() : () -> ()
    %155 = vector.shape_cast %154 : vector<4x8x32xf32> to vector<32x32xf32>
    %c2_93 = arith.constant 2 : index
    %c0_94 = arith.constant 0 : index
    %c0_95 = arith.constant 0 : index
    %156 = vector.load %arg8[%c2_93, %c0_94, %c0_95] : memref<3x32x32xf32, #tpu.memory_space<vmem>>, vector<1x32x32xf32>
    %157 = vector.shape_cast %156 : vector<1x32x32xf32> to vector<32x32xf32>
    %cst_96 = arith.constant dense<0.000000e+00> : vector<32x32xf32>
    %158 = tpu.matmul %155, %157, %cst_96 {dimension_numbers = #tpu.dot_dimension_numbers<[1], [0], [0], [1], [0, 0, 1, 1], [], []>} : vector<32x32xf32>, vector<32x32xf32>, vector<32x32xf32> -> vector<32x32xf32>
    %159 = arith.addf %125, %158 : vector<32x32xf32>
    %c2_97 = arith.constant 2 : index
    %c0_98 = arith.constant 0 : index
    %c0_99 = arith.constant 0 : index
    %160 = vector.load %arg9[%c2_97, %c0_98, %c0_99] : memref<3x1x32xf32, #tpu.memory_space<vmem>>, vector<1x1x32xf32>
    %161 = vector.shape_cast %160 : vector<1x1x32xf32> to vector<1x32xf32>
    %162 = vector.broadcast %161 : vector<1x32xf32> to vector<32x32xf32>
    %163 = arith.addf %159, %162 : vector<32x32xf32>
    %c2_100 = arith.constant 2 : index
    %c0_101 = arith.constant 0 : index
    %c0_102 = arith.constant 0 : index
    %164 = vector.load %arg10[%c2_100, %c0_101, %c0_102] : memref<3x32x32xf32, #tpu.memory_space<vmem>>, vector<1x32x32xf32>
    %165 = vector.shape_cast %164 : vector<1x32x32xf32> to vector<32x32xf32>
    %cst_103 = arith.constant dense<0.000000e+00> : vector<32x32xf32>
    %166 = tpu.matmul %163, %165, %cst_103 {dimension_numbers = #tpu.dot_dimension_numbers<[1], [0], [0], [1], [0, 0, 1, 1], [], []>} : vector<32x32xf32>, vector<32x32xf32>, vector<32x32xf32> -> vector<32x32xf32>
    %c2_104 = arith.constant 2 : index
    %c0_105 = arith.constant 0 : index
    %c0_106 = arith.constant 0 : index
    %167 = vector.load %arg11[%c2_104, %c0_105, %c0_106] : memref<3x1x32xf32, #tpu.memory_space<vmem>>, vector<1x1x32xf32>
    %168 = vector.shape_cast %167 : vector<1x1x32xf32> to vector<1x32xf32>
    %169 = vector.broadcast %168 : vector<1x32xf32> to vector<32x32xf32>
    %170 = arith.addf %166, %169 : vector<32x32xf32>
    %cst_107 = arith.constant 0.000000e+00 : f32
    %171 = vector.broadcast %cst_107 : f32 to vector<32x32xf32>
    %172 = arith.maximumf %170, %171 : vector<32x32xf32>
    %c2_108 = arith.constant 2 : index
    %c0_109 = arith.constant 0 : index
    %c0_110 = arith.constant 0 : index
    %173 = vector.load %arg12[%c2_108, %c0_109, %c0_110] : memref<3x32x32xf32, #tpu.memory_space<vmem>>, vector<1x32x32xf32>
    %174 = vector.shape_cast %173 : vector<1x32x32xf32> to vector<32x32xf32>
    %cst_111 = arith.constant dense<0.000000e+00> : vector<32x32xf32>
    %175 = tpu.matmul %172, %174, %cst_111 {dimension_numbers = #tpu.dot_dimension_numbers<[1], [0], [0], [1], [0, 0, 1, 1], [], []>} : vector<32x32xf32>, vector<32x32xf32>, vector<32x32xf32> -> vector<32x32xf32>
    %176 = arith.addf %163, %175 : vector<32x32xf32>
    %c2_112 = arith.constant 2 : index
    %c0_113 = arith.constant 0 : index
    %c0_114 = arith.constant 0 : index
    %177 = vector.load %arg13[%c2_112, %c0_113, %c0_114] : memref<3x1x32xf32, #tpu.memory_space<vmem>>, vector<1x1x32xf32>
    %178 = vector.shape_cast %177 : vector<1x1x32xf32> to vector<1x32xf32>
    %179 = vector.broadcast %178 : vector<1x32xf32> to vector<32x32xf32>
    %180 = arith.addf %176, %179 : vector<32x32xf32>
    %c0_115 = arith.constant 0 : index
    %c0_116 = arith.constant 0 : index
    %c0_117 = arith.constant 0 : index
    %181 = vector.load %arg14[%c0_115, %c0_116, %c0_117] : memref<3x32x32xf32, #tpu.memory_space<vmem>>, vector<1x32x32xf32>
    %182 = vector.shape_cast %181 : vector<1x32x32xf32> to vector<32x32xf32>
    %cst_118 = arith.constant dense<0.000000e+00> : vector<32x32xf32>
    %183 = tpu.matmul %180, %182, %cst_118 {dimension_numbers = #tpu.dot_dimension_numbers<[1], [0], [0], [1], [0, 0, 1, 1], [], []>} : vector<32x32xf32>, vector<32x32xf32>, vector<32x32xf32> -> vector<32x32xf32>
    %c0_119 = arith.constant 0 : index
    %c0_120 = arith.constant 0 : index
    %c0_121 = arith.constant 0 : index
    %184 = vector.load %arg15[%c0_119, %c0_120, %c0_121] : memref<3x1x32xf32, #tpu.memory_space<vmem>>, vector<1x1x32xf32>
    %185 = vector.shape_cast %184 : vector<1x1x32xf32> to vector<1x32xf32>
    %186 = vector.broadcast %185 : vector<1x32xf32> to vector<32x32xf32>
    %187 = arith.addf %183, %186 : vector<32x32xf32>
    %c1_122 = arith.constant 1 : index
    %c0_123 = arith.constant 0 : index
    %c0_124 = arith.constant 0 : index
    %188 = vector.load %arg14[%c1_122, %c0_123, %c0_124] : memref<3x32x32xf32, #tpu.memory_space<vmem>>, vector<1x32x32xf32>
    %189 = vector.shape_cast %188 : vector<1x32x32xf32> to vector<32x32xf32>
    %cst_125 = arith.constant dense<0.000000e+00> : vector<32x32xf32>
    %190 = tpu.matmul %180, %189, %cst_125 {dimension_numbers = #tpu.dot_dimension_numbers<[1], [0], [0], [1], [0, 0, 1, 1], [], []>} : vector<32x32xf32>, vector<32x32xf32>, vector<32x32xf32> -> vector<32x32xf32>
    %c1_126 = arith.constant 1 : index
    %c0_127 = arith.constant 0 : index
    %c0_128 = arith.constant 0 : index
    %191 = vector.load %arg15[%c1_126, %c0_127, %c0_128] : memref<3x1x32xf32, #tpu.memory_space<vmem>>, vector<1x1x32xf32>
    %192 = vector.shape_cast %191 : vector<1x1x32xf32> to vector<1x32xf32>
    %193 = vector.broadcast %192 : vector<1x32xf32> to vector<32x32xf32>
    %194 = arith.addf %190, %193 : vector<32x32xf32>
    %c2_129 = arith.constant 2 : index
    %c0_130 = arith.constant 0 : index
    %c0_131 = arith.constant 0 : index
    %195 = vector.load %arg14[%c2_129, %c0_130, %c0_131] : memref<3x32x32xf32, #tpu.memory_space<vmem>>, vector<1x32x32xf32>
    %196 = vector.shape_cast %195 : vector<1x32x32xf32> to vector<32x32xf32>
    %cst_132 = arith.constant dense<0.000000e+00> : vector<32x32xf32>
    %197 = tpu.matmul %180, %196, %cst_132 {dimension_numbers = #tpu.dot_dimension_numbers<[1], [0], [0], [1], [0, 0, 1, 1], [], []>} : vector<32x32xf32>, vector<32x32xf32>, vector<32x32xf32> -> vector<32x32xf32>
    %c2_133 = arith.constant 2 : index
    %c0_134 = arith.constant 0 : index
    %c0_135 = arith.constant 0 : index
    %198 = vector.load %arg15[%c2_133, %c0_134, %c0_135] : memref<3x1x32xf32, #tpu.memory_space<vmem>>, vector<1x1x32xf32>
    %199 = vector.shape_cast %198 : vector<1x1x32xf32> to vector<1x32xf32>
    %200 = vector.broadcast %199 : vector<1x32xf32> to vector<32x32xf32>
    %201 = arith.addf %197, %200 : vector<32x32xf32>
    %c0_136 = arith.constant 0 : index
    %c0_137 = arith.constant 0 : index
    %c0_138 = arith.constant 0 : index
    %202 = vector.load %arg16[%c0_136, %c0_137, %c0_138] : memref<3x32x32xf32, #tpu.memory_space<vmem>>, vector<1x32x32xf32>
    %203 = vector.shape_cast %202 : vector<1x32x32xf32> to vector<32x32xf32>
    %cst_139 = arith.constant dense<0.000000e+00> : vector<32x32xf32>
    %204 = tpu.matmul %3, %203, %cst_139 {dimension_numbers = #tpu.dot_dimension_numbers<[1], [0], [0], [1], [0, 0, 1, 1], [], []>} : vector<32x32xf32>, vector<32x32xf32>, vector<32x32xf32> -> vector<32x32xf32>
    %c0_140 = arith.constant 0 : index
    %c0_141 = arith.constant 0 : index
    %c0_142 = arith.constant 0 : index
    %205 = vector.load %arg17[%c0_140, %c0_141, %c0_142] : memref<3x1x32xf32, #tpu.memory_space<vmem>>, vector<1x1x32xf32>
    %206 = vector.shape_cast %205 : vector<1x1x32xf32> to vector<1x32xf32>
    %207 = vector.broadcast %206 : vector<1x32xf32> to vector<32x32xf32>
    %208 = arith.addf %204, %207 : vector<32x32xf32>
    %c1_143 = arith.constant 1 : index
    %c0_144 = arith.constant 0 : index
    %c0_145 = arith.constant 0 : index
    %209 = vector.load %arg16[%c1_143, %c0_144, %c0_145] : memref<3x32x32xf32, #tpu.memory_space<vmem>>, vector<1x32x32xf32>
    %210 = vector.shape_cast %209 : vector<1x32x32xf32> to vector<32x32xf32>
    %cst_146 = arith.constant dense<0.000000e+00> : vector<32x32xf32>
    %211 = tpu.matmul %3, %210, %cst_146 {dimension_numbers = #tpu.dot_dimension_numbers<[1], [0], [0], [1], [0, 0, 1, 1], [], []>} : vector<32x32xf32>, vector<32x32xf32>, vector<32x32xf32> -> vector<32x32xf32>
    %c1_147 = arith.constant 1 : index
    %c0_148 = arith.constant 0 : index
    %c0_149 = arith.constant 0 : index
    %212 = vector.load %arg17[%c1_147, %c0_148, %c0_149] : memref<3x1x32xf32, #tpu.memory_space<vmem>>, vector<1x1x32xf32>
    %213 = vector.shape_cast %212 : vector<1x1x32xf32> to vector<1x32xf32>
    %214 = vector.broadcast %213 : vector<1x32xf32> to vector<32x32xf32>
    %215 = arith.addf %211, %214 : vector<32x32xf32>
    %c2_150 = arith.constant 2 : index
    %c0_151 = arith.constant 0 : index
    %c0_152 = arith.constant 0 : index
    %216 = vector.load %arg16[%c2_150, %c0_151, %c0_152] : memref<3x32x32xf32, #tpu.memory_space<vmem>>, vector<1x32x32xf32>
    %217 = vector.shape_cast %216 : vector<1x32x32xf32> to vector<32x32xf32>
    %cst_153 = arith.constant dense<0.000000e+00> : vector<32x32xf32>
    %218 = tpu.matmul %3, %217, %cst_153 {dimension_numbers = #tpu.dot_dimension_numbers<[1], [0], [0], [1], [0, 0, 1, 1], [], []>} : vector<32x32xf32>, vector<32x32xf32>, vector<32x32xf32> -> vector<32x32xf32>
    %c2_154 = arith.constant 2 : index
    %c0_155 = arith.constant 0 : index
    %c0_156 = arith.constant 0 : index
    %219 = vector.load %arg17[%c2_154, %c0_155, %c0_156] : memref<3x1x32xf32, #tpu.memory_space<vmem>>, vector<1x1x32xf32>
    %220 = vector.shape_cast %219 : vector<1x1x32xf32> to vector<1x32xf32>
    %221 = vector.broadcast %220 : vector<1x32xf32> to vector<32x32xf32>
    %222 = arith.addf %218, %221 : vector<32x32xf32>
    %223 = arith.addf %187, %208 : vector<32x32xf32>
    %224 = arith.negf %223 : vector<32x32xf32>
    %225 = math.exp %224 : vector<32x32xf32>
    %cst_157 = arith.constant 1.000000e+00 : f32
    %226 = vector.broadcast %cst_157 : f32 to vector<32x32xf32>
    %227 = arith.addf %226, %225 : vector<32x32xf32>
    %228 = arith.divf %226, %227 : vector<32x32xf32>
    %229 = arith.addf %194, %215 : vector<32x32xf32>
    %230 = arith.negf %229 : vector<32x32xf32>
    %231 = math.exp %230 : vector<32x32xf32>
    %cst_158 = arith.constant 1.000000e+00 : f32
    %232 = vector.broadcast %cst_158 : f32 to vector<32x32xf32>
    %233 = arith.addf %232, %231 : vector<32x32xf32>
    %234 = arith.divf %232, %233 : vector<32x32xf32>
    %235 = arith.mulf %228, %222 : vector<32x32xf32>
    %236 = arith.addf %201, %235 : vector<32x32xf32>
    %237 = math.tanh %236 : vector<32x32xf32>
    %cst_159 = arith.constant 1.000000e+00 : f32
    %238 = vector.broadcast %cst_159 : f32 to vector<32x32xf32>
    %239 = arith.subf %238, %234 : vector<32x32xf32>
    %240 = arith.mulf %239, %237 : vector<32x32xf32>
    %241 = arith.mulf %234, %3 : vector<32x32xf32>
    %242 = arith.addf %240, %241 : vector<32x32xf32>
    %c0_160 = arith.constant 0 : index
    %c0_161 = arith.constant 0 : index
    %243 = vector.load %arg18[%c0_160, %c0_161] : memref<32x32xf32, #tpu.memory_space<vmem>>, vector<32x32xf32>
    %cst_162 = arith.constant dense<0.000000e+00> : vector<32x32xf32>
    %244 = tpu.matmul %242, %243, %cst_162 {dimension_numbers = #tpu.dot_dimension_numbers<[1], [0], [0], [1], [0, 0, 1, 1], [], []>} : vector<32x32xf32>, vector<32x32xf32>, vector<32x32xf32> -> vector<32x32xf32>
    %c0_163 = arith.constant 0 : index
    %c0_164 = arith.constant 0 : index
    %245 = vector.load %arg19[%c0_163, %c0_164] : memref<1x32xf32, #tpu.memory_space<vmem>>, vector<1x32xf32>
    %246 = vector.broadcast %245 : vector<1x32xf32> to vector<32x32xf32>
    %247 = arith.addf %244, %246 : vector<32x32xf32>
    %cst_165 = arith.constant 0.000000e+00 : f32
    %248 = vector.broadcast %cst_165 : f32 to vector<32x32xf32>
    %249 = arith.maximumf %247, %248 : vector<32x32xf32>
    %c0_166 = arith.constant 0 : index
    %c0_167 = arith.constant 0 : index
    %250 = vector.load %arg20[%c0_166, %c0_167] : memref<32x16xf32, #tpu.memory_space<vmem>>, vector<32x16xf32>
    %cst_168 = arith.constant dense<0.000000e+00> : vector<32x16xf32>
    %251 = tpu.matmul %249, %250, %cst_168 {dimension_numbers = #tpu.dot_dimension_numbers<[1], [0], [0], [1], [0, 0, 1, 1], [], []>} : vector<32x32xf32>, vector<32x16xf32>, vector<32x16xf32> -> vector<32x16xf32>
    %c0_169 = arith.constant 0 : index
    %c0_170 = arith.constant 0 : index
    %252 = vector.load %arg21[%c0_169, %c0_170] : memref<1x16xf32, #tpu.memory_space<vmem>>, vector<1x16xf32>
    %253 = vector.broadcast %252 : vector<1x16xf32> to vector<32x16xf32>
    %254 = arith.addf %251, %253 : vector<32x16xf32>
    %255 = tpu.concatenate %254, %242 in 1 : vector<32x16xf32>, vector<32x32xf32> -> vector<32x48xf32>
    %256 = vector.shape_cast %255 : vector<32x48xf32> to vector<4x8x48xf32>
    %c0_171 = arith.constant 0 : index
    %c0_172 = arith.constant 0 : index
    %c0_173 = arith.constant 0 : index
    %257 = vector.load %arg22[%c0_171, %c0_172, %c0_173] : memref<4x8x48xf32, #tpu.memory_space<vmem>>, vector<4x8x48xf32>
    tpu.vector_store %arg22[%c0_171, %c0_172, %c0_173], %256 {strides = array<i32>} : memref<4x8x48xf32, #tpu.memory_space<vmem>>, vector<4x8x48xf32>,
    return
  }
  func.func @transform_0(%arg0: i32) -> (i32, i32, i32) {
    %c0_i32 = arith.constant 0 : i32
    %c0_i32_0 = arith.constant 0 : i32
    %c0_i32_1 = arith.constant 0 : i32
    return %arg0, %c0_i32, %c0_i32_0 : i32, i32, i32
  }
  func.func @transform_1(%arg0: i32) -> (i32, i32, i32) {
    %c0_i32 = arith.constant 0 : i32
    %c0_i32_0 = arith.constant 0 : i32
    %c0_i32_1 = arith.constant 0 : i32
    return %arg0, %c0_i32, %c0_i32_0 : i32, i32, i32
  }
  func.func @transform_2(%arg0: i32) -> (i32, i32, i32) {
    %c0_i32 = arith.constant 0 : i32
    %c0_i32_0 = arith.constant 0 : i32
    %c0_i32_1 = arith.constant 0 : i32
    return %arg0, %c0_i32, %c0_i32_0 : i32, i32, i32
  }
  func.func @transform_3(%arg0: i32) -> (i32, i32) {
    %c0_i32 = arith.constant 0 : i32
    %c0_i32_0 = arith.constant 0 : i32
    %c0_i32_1 = arith.constant 0 : i32
    return %c0_i32, %c0_i32_0 : i32, i32
  }
  func.func @transform_4(%arg0: i32) -> (i32, i32) {
    %c0_i32 = arith.constant 0 : i32
    %c0_i32_0 = arith.constant 0 : i32
    %c0_i32_1 = arith.constant 0 : i32
    return %c0_i32, %c0_i32_0 : i32, i32
  }
  func.func @transform_5(%arg0: i32) -> (i32, i32, i32) {
    %c0_i32 = arith.constant 0 : i32
    %c0_i32_0 = arith.constant 0 : i32
    %c0_i32_1 = arith.constant 0 : i32
    %c0_i32_2 = arith.constant 0 : i32
    return %c0_i32, %c0_i32_0, %c0_i32_1 : i32, i32, i32
  }
  func.func @transform_6(%arg0: i32) -> (i32, i32, i32) {
    %c0_i32 = arith.constant 0 : i32
    %c0_i32_0 = arith.constant 0 : i32
    %c0_i32_1 = arith.constant 0 : i32
    %c0_i32_2 = arith.constant 0 : i32
    return %c0_i32, %c0_i32_0, %c0_i32_1 : i32, i32, i32
  }
  func.func @transform_7(%arg0: i32) -> (i32, i32, i32) {
    %c0_i32 = arith.constant 0 : i32
    %c0_i32_0 = arith.constant 0 : i32
    %c0_i32_1 = arith.constant 0 : i32
    %c0_i32_2 = arith.constant 0 : i32
    return %c0_i32, %c0_i32_0, %c0_i32_1 : i32, i32, i32
  }
  func.func @transform_8(%arg0: i32) -> (i32, i32, i32) {
    %c0_i32 = arith.constant 0 : i32
    %c0_i32_0 = arith.constant 0 : i32
    %c0_i32_1 = arith.constant 0 : i32
    %c0_i32_2 = arith.constant 0 : i32
    return %c0_i32, %c0_i32_0, %c0_i32_1 : i32, i32, i32
  }
  func.func @transform_9(%arg0: i32) -> (i32, i32, i32) {
    %c0_i32 = arith.constant 0 : i32
    %c0_i32_0 = arith.constant 0 : i32
    %c0_i32_1 = arith.constant 0 : i32
    %c0_i32_2 = arith.constant 0 : i32
    return %c0_i32, %c0_i32_0, %c0_i32_1 : i32, i32, i32
  }
  func.func @transform_10(%arg0: i32) -> (i32, i32, i32) {
    %c0_i32 = arith.constant 0 : i32
    %c0_i32_0 = arith.constant 0 : i32
    %c0_i32_1 = arith.constant 0 : i32
    %c0_i32_2 = arith.constant 0 : i32
    return %c0_i32, %c0_i32_0, %c0_i32_1 : i32, i32, i32
  }
  func.func @transform_11(%arg0: i32) -> (i32, i32, i32) {
    %c0_i32 = arith.constant 0 : i32
    %c0_i32_0 = arith.constant 0 : i32
    %c0_i32_1 = arith.constant 0 : i32
    %c0_i32_2 = arith.constant 0 : i32
    return %c0_i32, %c0_i32_0, %c0_i32_1 : i32, i32, i32
  }
  func.func @transform_12(%arg0: i32) -> (i32, i32, i32) {
    %c0_i32 = arith.constant 0 : i32
    %c0_i32_0 = arith.constant 0 : i32
    %c0_i32_1 = arith.constant 0 : i32
    %c0_i32_2 = arith.constant 0 : i32
    return %c0_i32, %c0_i32_0, %c0_i32_1 : i32, i32, i32
  }
  func.func @transform_13(%arg0: i32) -> (i32, i32, i32) {
    %c0_i32 = arith.constant 0 : i32
    %c0_i32_0 = arith.constant 0 : i32
    %c0_i32_1 = arith.constant 0 : i32
    %c0_i32_2 = arith.constant 0 : i32
    return %c0_i32, %c0_i32_0, %c0_i32_1 : i32, i32, i32
  }
  func.func @transform_14(%arg0: i32) -> (i32, i32, i32) {
    %c0_i32 = arith.constant 0 : i32
    %c0_i32_0 = arith.constant 0 : i32
    %c0_i32_1 = arith.constant 0 : i32
    %c0_i32_2 = arith.constant 0 : i32
    return %c0_i32, %c0_i32_0, %c0_i32_1 : i32, i32, i32
  }
  func.func @transform_15(%arg0: i32) -> (i32, i32, i32) {
    %c0_i32 = arith.constant 0 : i32
    %c0_i32_0 = arith.constant 0 : i32
    %c0_i32_1 = arith.constant 0 : i32
    %c0_i32_2 = arith.constant 0 : i32
    return %c0_i32, %c0_i32_0, %c0_i32_1 : i32, i32, i32
  }
  func.func @transform_16(%arg0: i32) -> (i32, i32, i32) {
    %c0_i32 = arith.constant 0 : i32
    %c0_i32_0 = arith.constant 0 : i32
    %c0_i32_1 = arith.constant 0 : i32
    %c0_i32_2 = arith.constant 0 : i32
    return %c0_i32, %c0_i32_0, %c0_i32_1 : i32, i32, i32
  }
  func.func @transform_17(%arg0: i32) -> (i32, i32) {
    %c0_i32 = arith.constant 0 : i32
    %c0_i32_0 = arith.constant 0 : i32
    %c0_i32_1 = arith.constant 0 : i32
    return %c0_i32, %c0_i32_0 : i32, i32
  }
  func.func @transform_18(%arg0: i32) -> (i32, i32) {
    %c0_i32 = arith.constant 0 : i32
    %c0_i32_0 = arith.constant 0 : i32
    %c0_i32_1 = arith.constant 0 : i32
    return %c0_i32, %c0_i32_0 : i32, i32
  }
  func.func @transform_19(%arg0: i32) -> (i32, i32) {
    %c0_i32 = arith.constant 0 : i32
    %c0_i32_0 = arith.constant 0 : i32
    %c0_i32_1 = arith.constant 0 : i32
    return %c0_i32, %c0_i32_0 : i32, i32
  }
  func.func @transform_20(%arg0: i32) -> (i32, i32) {
    %c0_i32 = arith.constant 0 : i32
    %c0_i32_0 = arith.constant 0 : i32
    %c0_i32_1 = arith.constant 0 : i32
    return %c0_i32, %c0_i32_0 : i32, i32
  }
  func.func @transform_21(%arg0: i32) -> (i32, i32, i32) {
    %c0_i32 = arith.constant 0 : i32
    %c0_i32_0 = arith.constant 0 : i32
    %c0_i32_1 = arith.constant 0 : i32
    return %arg0, %c0_i32, %c0_i32_0 : i32, i32, i32
  }
}

</mosaic_0001>

<bundles_post_ra>
// kernel: tpu_custom_call.1
= control target key start
LH: loop header
LB: loop body
LE: loop exit
PB: predicated region body
PF: predicated region fallthrough
CT: control target
= control target key end

     0   :  { %s5163_s0 = inlined_call_operand.hbm [shape: f32[8,8,21], index: 0, kind: input, shape index: {}]   ;;  %s5164_s1 = inlined_call_operand.hbm [shape: f32[8,8,32], index: 1, kind: input, shape index: {}]   ;;  %s5165_s2 = inlined_call_operand.vmem [shape: f32[8,1,8], index: 2, kind: input, shape index: {}]   ;;  %s5166_s3 = inlined_call_operand.hbm [shape: f32[21,32], index: 3, kind: input, shape index: {}]   ;;  %s5167_s4 = inlined_call_operand.vmem [shape: f32[1,32], index: 4, kind: input, shape index: {}]   ;;  %s5168_s5 = inlined_call_operand.hbm [shape: f32[3,32,96], index: 5, kind: input, shape index: {}]   ;;  %s5169_s6 = inlined_call_operand.vmem [shape: f32[3,1,96], index: 6, kind: input, shape index: {}]   ;;  %s5170_s7 = inlined_call_operand.hbm [shape: f32[3,32,32], index: 7, kind: input, shape index: {}]   ;;  %s5171_s8 = inlined_call_operand.vmem [shape: f32[3,1,32], index: 8, kind: input, shape index: {}]   ;;  %s5172_s9 = inlined_call_operand.hbm [shape: f32[3,32,32], index: 9, kind: input, shape index: {}]   ;;  %s5173_s10 = inlined_call_operand.vmem [shape: f32[3,1,32], index: 10, kind: input, shape index: {}]   ;;  %s5174_s11 = inlined_call_operand.hbm [shape: f32[3,32,32], index: 11, kind: input, shape index: {}]   ;;  %s5175_s12 = inlined_call_operand.hbm [shape: f32[3,1,32], index: 12, kind: input, shape index: {}]   ;;  %s5176_s13 = inlined_call_operand.hbm [shape: f32[3,32,32], index: 13, kind: input, shape index: {}]   ;;  %s5177_s14 = inlined_call_operand.hbm [shape: f32[3,1,32], index: 14, kind: input, shape index: {}]   ;;  %s5178_s15 = inlined_call_operand.hbm [shape: f32[3,32,32], index: 15, kind: input, shape index: {}]   ;;  %s5179_s16 = inlined_call_operand.hbm [shape: f32[3,1,32], index: 16, kind: input, shape index: {}]   ;;  %s5180_s17 = inlined_call_operand.vmem [shape: f32[32,32], index: 17, kind: input, shape index: {}]   ;;  %s5181_s18 = inlined_call_operand.hbm [shape: f32[1,32], index: 18, kind: input, shape index: {}]   ;;  %s5182_s19 = inlined_call_operand.vmem [shape: f32[32,16], index: 19, kind: input, shape index: {}]   ;;  %s5183_s20 = inlined_call_operand.vmem [shape: f32[1,16], index: 20, kind: input, shape index: {}]   ;;  %s5184_s21 = inlined_call_operand.hbm [shape: f32[8,8,48], index: 21, kind: output, shape index: {}]  }
   0x1   :  { %5196 = sst [smem:[#allocation33_spill]] %s5163_s0 }
   0x2   :  { %5197 = sst [smem:[#allocation34_spill]] %s5164_s1 }
   0x3   :  { %5198 = sst [smem:[#allocation35_spill]] %s5165_s2 }
   0x4   :  { %5199 = sst [smem:[#allocation36_spill]] %s5166_s3 }
   0x5   :  { %5200 = sst [smem:[#allocation37_spill]] %s5167_s4 }
   0x6   :  { %5201 = sst [smem:[#allocation38_spill]] %s5168_s5 }
   0x7   :  { %5202 = sst [smem:[#allocation39_spill]] %s5170_s7 }
   0x8   :  { %5203 = sst [smem:[#allocation40_spill]] %s5171_s8 }
   0x9   :  { %5204 = sst [smem:[#allocation41_spill]] %s5172_s9 }
   0xa   :  { %5205 = sst [smem:[#allocation42_spill]] %s5173_s10 }
   0xb   :  { %5206 = sst [smem:[#allocation43_spill]] %s5174_s11 }
   0xc   :  { %5207 = sst [smem:[#allocation44_spill]] %s5175_s12 }
   0xd   :  { %5208 = sst [smem:[#allocation45_spill]] %s5176_s13 }
   0xe   :  { %5209 = sst [smem:[#allocation46_spill]] %s5177_s14 }
   0xf   :  { %5210 = sst [smem:[#allocation47_spill]] %s5178_s15 }
  0x10   :  { %5211 = sst [smem:[#allocation48_spill]] %s5179_s16 }
  0x11   :  { %5212 = sst [smem:[#allocation49_spill]] %s5180_s17 }
  0x12   :  { %5213 = sst [smem:[#allocation50_spill]] %s5181_s18 }
  0x13   :  { %5214 = sst [smem:[#allocation51_spill]] %s5182_s19 }
  0x14   :  { %5215 = sst [smem:[#allocation52_spill]] %s5183_s20 }
  0x15   :  { %5216 = sst [smem:[#allocation53_spill]] %s5184_s21 }
  0x16   :  { %26 = vsyncpa [#allocation3], 0 }
  0x17   :  { %28 = vsyncpa [#allocation3 + $0x1], 0 }
  0x18   :  { %29 = vsyncpa [#allocation6], 0 }
  0x19   :  { %31 = vsyncpa [#allocation6 + $0x1], 0 }
  0x1a   :  { %32 = vsyncpa [#allocation9], 0 }
  0x1b   :  { %33 = vsyncpa [#allocation12], 0 }
  0x1c   :  { %34 = vsyncpa [#allocation15], 0 }
  0x1d   :  { %35 = vsyncpa [#allocation18], 0 }
  0x1e   :  { %36 = vsyncpa [#allocation21], 0 }
  0x1f   :  { %37 = vsyncpa [#allocation4], 0 }
  0x20   :  { %39 = vsyncpa [#allocation4 + $0x1], 0  ;;  %s4345_s2 = smov 0   ;;  %s4347_s25 = smov 0  }
  0x21   :  { %s4349_s26 = smov 0   ;;  %s4351_s27 = smov 0  }
  0x22 LB: > { %s5217_s29 = sld [smem:[#allocation36_spill]]  ;;  %s4369_s4 = sadd.s32 4294967295, %s4213_s27   ;;  %s4213_s27 = sphi %s4351_s27, %s5261_s27   ;;  %s4209_s26 = sphi %s4349_s26, %s5260_s26   ;;  %s4205_s25 = sphi %s4347_s25, %s5259_s25   ;;  %s4201_s2 = sphi %s4345_s2, %s5258_s2  }
  0x23   : > { %p3259_p0 = scmp.ge.s32.totalorder %s4213_s27, 1  ;;  %p66_p1 = scmp.eq.s32.totalorder %s4369_s4, 0 }
  0x24   : > { %p532_p2 = scmp.lt.s32.totalorder %s4213_s27, 3  ;;  %s4215_s5 = smov [#allocation7]  }
  0x25   : > { %s545_s22 = sshll.u32 %s4215_s5, 4  ;;  %s5219_s24 = sld [smem:[#allocation38_spill]]  ;;  %s546_s22 = int_to_ptr.vmem [resolvable:$true] %s545_s22 }
  0x26   : > { %p4374_p3 = pnand %p3259_p0, %p532_p2  ;;  %s5221_s9 = sld [smem:[#allocation41_spill]] }
  0x27   : > { %s4216_s20 = smov [#allocation8]   ;;  %s5192_s17 = smov 128  }
  0x28   : > { %s543_s0 = sshll.u32 %s5217_s29, 4  ;;  %p3494_p4 = pneg %p4374_p3  ;;  %s544_s0 = int_to_ptr.hbm [resolvable:$true] %s543_s0 }
  0x29   : > { %s562_s19 = sshll.u32 %s4216_s20, 4  ;;  %s5194_s10 = smov 8   ;;  %s563_s19 = int_to_ptr.vmem [resolvable:$true] %s562_s19 }
  0x2a   : > { %p4386_p6 = pnand %p3494_p4, %p66_p1  ;;  %s5222_s12 = sld [smem:[#allocation44_spill]] }
  0x2b   : > { %s560_s3 = sshll.u32 %s5219_s24, 4  ;;  %s4219_s20 = smov [#allocation11]   ;;  %s561_s3 = int_to_ptr.hbm [resolvable:$true] %s560_s3 }
  0x2c   : > { %s594_s5 = sshll.u32 %s5221_s9, 4  ;;  %s596_s24 = sshll.u32 %s4219_s20, 4  ;;  %s595_s5 = int_to_ptr.hbm [resolvable:$true] %s594_s5  ;;  %s597_s24 = int_to_ptr.vmem [resolvable:$true] %s596_s24 }
  0x2d   : > { %3497 = dma.hbm_to_vmem [thread:$0]  (!%p4386_p6), %s544_s0, 384, %s546_s22, [#allocation6], %s5192_s17, %s5192_s17, %s5194_s10  }
  0x2e   : > { %3500 = dma.hbm_to_vmem [thread:$0]  (!%p4386_p6), %s561_s3, 1536, %s563_s19, [#allocation9], %s5192_s17, %s5192_s17, %s5194_s10  }
  0x2f   : > { %3506 = dma.hbm_to_vmem [thread:$0]  (!%p4386_p6), %s595_s5, 1536, %s597_s24, [#allocation12], %s5192_s17, %s5192_s17, %s5194_s10  }
  0x30   : > { %s625_s1 = sshll.u32 %s5222_s12, 4  ;;  %s4220_s0 = smov [#allocation14]   ;;  %s626_s1 = int_to_ptr.hbm [resolvable:$true] %s625_s1 }
  0x31   : > { %s627_s22 = sshll.u32 %s4220_s0, 4  ;;  %s4221_s29 = smov 16   ;;  %s628_s22 = int_to_ptr.vmem [resolvable:$true] %s627_s22 }
  0x32   : > { %s4222_s19 = smov 1   ;;  %s5223_s14 = sld [smem:[#allocation46_spill]] }
  0x33   : > { %3512 = dma.hbm_to_vmem [thread:$0]  (!%p4386_p6), %s626_s1, 48, %s628_s22, [#allocation15], %s4221_s29, %s4221_s29, %s4222_s19  }
  0x34   : > { %s4223_s20 = smov [#allocation17]   ;;  %s5224_s16 = sld [smem:[#allocation48_spill]] }
  0x35   : > { %s655_s9 = sshll.u32 %s4223_s20, 4  ;;  %s4224_s24 = smov [#allocation20]   ;;  %s656_s9 = int_to_ptr.vmem [resolvable:$true] %s655_s9 }
  0x36   : > { %s683_s0 = sshll.u32 %s4224_s24, 4  ;;  %s5225_s7 = sld [smem:[#allocation39_spill]]  ;;  %s684_s0 = int_to_ptr.vmem [resolvable:$true] %s683_s0 }
  0x37   : > { %s5226_s11 = sld [smem:[#allocation43_spill]]  ;;  %s4225_s8 = smov [#allocation10]  }
  0x38   : > { %s653_s21 = sshll.u32 %s5223_s14, 4  ;;  %s579_s12 = sshll.u32 %s4225_s8, 4  ;;  %s654_s21 = int_to_ptr.hbm [resolvable:$true] %s653_s21  ;;  %s580_s12 = int_to_ptr.vmem [resolvable:$true] %s579_s12 }
  0x39   : > { %3518 = dma.hbm_to_vmem [thread:$0]  (!%p4386_p6), %s654_s21, 48, %s656_s9, [#allocation18], %s4221_s29, %s4221_s29, %s4222_s19  }
  0x3a   : > { %s681_s5 = sshll.u32 %s5224_s16, 4  ;;  %s5227_s9 = smov 128   ;;  %s682_s5 = int_to_ptr.hbm [resolvable:$true] %s681_s5 }
  0x3b   : > { %3524 = dma.hbm_to_vmem [thread:$0]  (!%p4386_p6), %s682_s5, 48, %s684_s0, [#allocation21], %s4221_s29, %s4221_s29, %s4222_s19  }
  0x3c   : > { %s577_s22 = sshll.u32 %s5225_s7, 4  ;;  %s4226_s17 = smov [#allocation13]   ;;  %s578_s22 = int_to_ptr.hbm [resolvable:$true] %s577_s22 }
  0x3d   : > { %s611_s20 = sshll.u32 %s5226_s11, 4  ;;  %s613_s21 = sshll.u32 %s4226_s17, 4  ;;  %s612_s20 = int_to_ptr.hbm [resolvable:$true] %s611_s20  ;;  %s614_s21 = int_to_ptr.vmem [resolvable:$true] %s613_s21 }
  0x3e   : > { %3503 = dma.hbm_to_vmem [thread:$0]  (!%p4386_p6), %s578_s22, 1536, %s580_s12, [#allocation9], %s5227_s9, %s5227_s9, %s5194_s10  }
  0x3f   : > { %s5228_s13 = sld [smem:[#allocation45_spill]]  ;;  %s4227_s22 = smov [#allocation16]  }
  0x40   : > { %3509 = dma.hbm_to_vmem [thread:$0]  (!%p4386_p6), %s612_s20, 1536, %s614_s21, [#allocation12], %s5227_s9, %s5227_s9, %s5194_s10  }
  0x41   : > { %s5229_s15 = sld [smem:[#allocation47_spill]]  ;;  %s641_s3 = sshll.u32 %s4227_s22, 4  ;;  %s642_s3 = int_to_ptr.vmem [resolvable:$true] %s641_s3 }
  0x42   : > { %s4228_s23 = smov [#allocation19]   ;;  %s5230_s18 = sld [smem:[#allocation50_spill]] }
  0x43   : > { %s669_s20 = sshll.u32 %s4228_s23, 4  ;;  %s4229_s21 = smov [#allocation22]   ;;  %s670_s20 = int_to_ptr.vmem [resolvable:$true] %s669_s20 }
  0x44   : > { %s701_s24 = sshll.u32 %s4229_s21, 4  ;;  %s3258_s1 = sadd.s32 4294967294, %s4213_s27   ;;  %s702_s24 = int_to_ptr.vmem [resolvable:$true] %s701_s24 }
  0x45   : > { %s639_s29 = sshll.u32 %s5228_s13, 4  ;;  %s52_s19 = sadd.s32 1, %s4209_s26  ;;  %s640_s29 = int_to_ptr.hbm [resolvable:$true] %s639_s29 }
  0x46   : > { %3515 = dma.hbm_to_vmem [thread:$0]  (!%p4386_p6), %s640_s29, 1536, %s642_s3, [#allocation15], %s5227_s9, %s5227_s9, %s5194_s10  }
  0x47   : > { %s667_s0 = sshll.u32 %s5229_s15, 4  ;;  %s4462_s29 = sadd.s32 1, %s4213_s27   ;;  %s668_s0 = int_to_ptr.hbm [resolvable:$true] %s667_s0 }
  0x48   : > { %s699_s17 = sshll.u32 %s5230_s18, 4  ;;  %s49_s5 = ssub.s32 %s4213_s27, %s4462_s29  ;;  %s700_s17 = int_to_ptr.hbm [resolvable:$true] %s699_s17 }
  0x49   : > { %3521 = dma.hbm_to_vmem [thread:$0]  (!%p4386_p6), %s668_s0, 1536, %s670_s20, [#allocation18], %s5227_s9, %s5227_s9, %s5194_s10  }
  0x4a   : > { %3527 = dma.hbm_to_vmem [thread:$0]  (!%p4386_p6), %s700_s17, 16, %s702_s24, [#allocation21]  }
  0x4b   : > { %p59_p7 = scmp.ne.s32.totalorder %s4209_s26, %s4205_s25  ;;  %p50_p8 = scmp.eq.s32.totalorder %s49_s5, 0 }
  0x4c   : > { %p60_p9 = scmp.eq.s32.totalorder %s4213_s27, 0  ;;  %p65_p10 = scmp.ne.s32.totalorder %s4205_s25, %s4201_s2 }
  0x4d   : > { %p519_p11 = scmp.eq.s32.totalorder %s4369_s4, 1  ;;  %p525_p2 = scmp.eq.s32.totalorder %s3258_s1, 1 }
  0x4e   : > { %s4474_s0 = scalar_select %p50_p8, %s4209_s26, %s52_s19  }
  0x4f   : > { %p4476_p12 = por %p60_p9, %p59_p7  ;;  %p4482_p13 = por %p66_p1, %p65_p10 }
  0x50   : > { %p4486_p0 = por %p519_p11, %p59_p7  ;;  %p3550_p4 = scmp.lt.s32.totalorder %s4213_s27, 2 }
  0x51   : > { %s718_s23 = sand.u32 1, %s4209_s26   ;;  %p4492_p6 = por %p525_p2, %p65_p10 }
  0x52   : > { %s3272_s8 = sshll.u32 %s718_s23, 5  ;;  %s3438_s12 = sshll.u32 %s4213_s27, 5 }
  0x53   : > { %s5235_s24 = sld [smem:[#allocation33_spill]]  ;;  %s722_s10 = scalar_lea.vmem [#allocation2], %s3272_s8 }
  0x54   : > { %s730_s7 = sshll.u32 %s722_s10, 4  ;;  %p4502_p7 = pnand %p3550_p4, %p4476_p12  ;;  %s731_s7 = int_to_ptr.vmem [resolvable:$true] %s730_s7 }
  0x55   : > { %s5237_s14 = sld [smem:[#allocation34_spill]]  ;;  %s744_s16 = scalar_lea.vmem [#allocation5], %s3272_s8 }
  0x56   : > { %s4509_s18 = sshll.u32 %s744_s16, 4  ;;  %s719_s21 = scalar_lea.sflag [#allocation3], %s718_s23  ;;  %s753_s18 = int_to_ptr.vmem [resolvable:$true] %s4509_s18 }
  0x57   : > { %p4063_p9 = pneg %p4502_p7 }
  0x59   : > { %s727_s19 = scalar_lea.hbm %s5235_s24, %s3438_s12  ;;  %s4066_s13 = scalar_lea.hbm %s5235_s24, 64 }
  0x5a   : > { %s728_s5 = sshll.u32 %s727_s19, 4  ;;  %s729_s5 = int_to_ptr.hbm [resolvable:$true] %s728_s5 }
  0x5b   : > { %s749_s15 = scalar_lea.hbm %s5237_s14, %s3438_s12  ;;  %s4059_s19 = sshra.s32 %s729_s5, 4  ;;  %s4060_s19 = int_to_ptr.hbm [resolvable:$true] %s4059_s19 }
  0x5c   : > { %s750_s17 = sshll.u32 %s749_s15, 4  ;;  %s4061_s10 = scalar_lea.hbm %s4060_s19, 32  ;;  %s751_s17 = int_to_ptr.hbm [resolvable:$true] %s750_s17 }
  0x5d   : > { %p4062_p8 = scmp.ne.s32.totalorder %s4060_s19, %s4061_s10  ;;  %p4067_p12 = scmp.lt.s32.totalorder %s4060_s19, %s5235_s24 }
  0x5e   : > { %p4068_p2 = scmp.lt.s32.totalorder %s4066_s13, %s4061_s10 }
  0x5f   : > { %p4064_p10 = pnand %p4063_p9, %p4062_p8 }
  0x60   : > { %p4069_p4 = por %p4068_p2, %p4067_p12 }
  0x61   : > { %p4065_p11 = pneg %p4064_p10 }
  0x63   : > { %p4070_p5 = pnand %p4069_p4, %p4065_p11 }
  0x65   : > { %4073 = shalt.err (!%p4070_p5)
}
  0x66   : > { %s5238_s15 = smov 8   ;;  %s740_s16 = sand.u32 1, %s4213_s27  }
  0x67   : > { %3531 = dma.hbm_to_vmem [thread:$0]  (!%p4502_p7), %s729_s5, 512, %s731_s7, %s719_s21, %s5227_s9, %s5227_s9, %s5238_s15  }
  0x68   : > { %s741_s23 = scalar_lea.sflag [#allocation6], %s740_s16  ;;  %s4089_s22 = sshra.s32 %s751_s17, 4  ;;  %s4090_s22 = int_to_ptr.hbm [resolvable:$true] %s4089_s22 }
  0x69   : > { %s4091_s19 = scalar_lea.hbm %s4090_s22, 32  ;;  %s4096_s13 = scalar_lea.hbm %s5237_s14, 64 }
  0x6a   : > { %p4092_p8 = scmp.ne.s32.totalorder %s4090_s22, %s4091_s19  ;;  %p4097_p11 = scmp.lt.s32.totalorder %s4090_s22, %s5237_s14 }
  0x6b   : > { %p4098_p12 = scmp.lt.s32.totalorder %s4096_s13, %s4091_s19 }
  0x6c   : > { %p4094_p5 = pnand %p4092_p8, %p4063_p9 }
  0x6d   : > { %p4099_p2 = por %p4098_p12, %p4097_p11 }
  0x6e   : > { %p4095_p10 = pneg %p4094_p5 }
  0x70   : > { %p4100_p4 = pnand %p4099_p2, %p4095_p10 }
  0x72   : > { %4103 = shalt.err (!%p4100_p4)
}
  0x73   : > { %3534 = dma.hbm_to_vmem [thread:$0]  (!%p4502_p7), %s751_s17, 512, %s753_s18, %s741_s23, %s5227_s9, %s5227_s9, %s5238_s15  }
  0x74   : > { %772 = sbr.rel (%p4374_p3) target bundleno = 4286 (0x10be), region = 104  ;;  %s4546_s7 = sand.u32 (!%p4374_p3), 1, %s4205_s25  }
  0x75   : > { %s4549_s5 = sshll.u32 (!%p4374_p3), %s4546_s7, 5  ;;  %s775_s21 = scalar_lea.sflag (!%p4374_p3), [#allocation3], %s4546_s7 }
  0x76   : > { %s4553_s16 = scalar_lea.vmem (!%p4374_p3), [#allocation2], %s4549_s5 }
  0x79   : > { %4164 = dma.done.wait (%p4482_p13), %s775_s21, 512  }
  0x7a   : > { %4166 = vsyncadd (%p4482_p13), %s775_s21, 4294966784  ;;  %s784_s18 = sand.u32 1, %s4369_s4   ;;  %s4561_s9 = scalar_lea.vmem [#allocation5], %s4549_s5 }
  0x7b   : > { %s785_s30 = scalar_lea.sflag [#allocation6], %s784_s18 }
  0x7c   : > { %4168 = dma.done.wait (%p4482_p13), %s785_s30, 512  }
  0x7d   : > { %4170 = vsyncadd (%p4482_p13), %s785_s30, 4294966784 }
  0x7e   : > { %4172 = dma.done.wait (%p66_p1), [#allocation6], 384  }
  0x7f   : > { %4174 = vsyncadd (%p66_p1), [#allocation6], 4294966912 }
  0x80   : > { %4176 = dma.done.wait (%p66_p1), [#allocation9], 3072  }
  0x81   : > { %4178 = vsyncadd (%p66_p1), [#allocation9], 4294964224 }
  0x82   : > { %4180 = dma.done.wait (%p66_p1), [#allocation12], 3072  }
  0x83   : > { %4182 = vsyncadd (%p66_p1), [#allocation12], 4294964224 }
  0x84   : > { %4184 = dma.done.wait (%p66_p1), [#allocation15], 1584  }
  0x85   : > { %4186 = vsyncadd (%p66_p1), [#allocation15], 4294965712 }
  0x86   : > { %4188 = dma.done.wait (%p66_p1), [#allocation18], 1584  }
  0x87   : > { %4190 = vsyncadd (%p66_p1), [#allocation18], 4294965712 }
  0x88   : > { %4192 = dma.done.wait (%p66_p1), [#allocation21], 64  }
  0x89   : > { %4194 = vsyncadd (%p66_p1), [#allocation21], 4294967232  ;;  %vm960_vm0 = vcmask 1044480   ;;  %v942_v0 = vld [vmem:[#allocation7 + $0x10] sm:$0x1f]  ;;  %v941_v1 = vld [vmem:[#allocation7 + $0x8] sm:$0xff] }
  0x8a   : > { %3298 = vmatpush.msk.msra.mxu0 %vm960_vm0, %v942_v0  ;;  %v940_v2 = vld [vmem:[#allocation7] sm:$0xff]  ;;  %3441 = vmatpush.msk.msra.mxu1 %vm960_vm0, %v942_v0  ;;  %v921_v4 = vld [vmem:[%s4553_s16 + $0x8] sm:$0xff]  ;;  %vm947_vm1 = vcmask 171008   ;;  %v1000_v5 = vld [vmem:[#allocation8 + $0x18] sm:$0xff]  ;;  %s5239_s17 = sld [smem:[#allocation37_spill]]  ;;  %vm1005_vm2 = vcmask 261120  }
  0x8b   : > { %v920_v3 = vld [vmem:[%s4553_s16] sm:$0xff]  ;;  %v922_v6 = vld [vmem:[%s4553_s16 + $0x10] sm:$0xff]  ;;  %v923_v7 = vld [vmem:[%s4553_s16 + $0x18] sm:$0xff]  ;;  %s4230_s22 = smov 96   ;;  %s3293_s19 = sshll.u32 %s4369_s4, 2  ;;  %vm1175_vm3 = vcmask 64512  }
  0x8c   : > { %978 = vmatpush.msra.mxu0 %v941_v1  ;;  %3442 = vmatpush.msra.mxu1 %v941_v1  ;;  %v999_v8 = vld [vmem:[#allocation8 + $0x10] sm:$0xff]  ;;  %v998_v9 = vld [vmem:[#allocation8 + $0x8] sm:$0xff]  ;;  %v997_v10 = vld [vmem:[#allocation8] sm:$0xff]  ;;  %p915_p1 = scmp.lt.s32.totalorder %s3293_s19, 7  ;;  %s5240_s13 = sld [smem:[#allocation35_spill]] }
  0x8d   : > { %v3621_v24 = vld [vmem:[%s5169_s6] ss:$0 sm:$0xff]  ;;  %s4231_s8 = smov 64   ;;  %s5241_s18 = sld [smem:[#allocation40_spill]] }
  0x8e   : > { %979 = vmatpush.msra.mxu0 %v940_v2  ;;  %3443 = vmatpush.msra.mxu1 %v940_v2  ;;  %s5263_s19 = smov (!%p915_p1, %s3293_s19), 7  ;;  %s5242_s1 = sld [smem:[#allocation42_spill]] }
  0x8f   : > { %3299 = vmatmul.msk.f32.vlgmr.msra.gmra.mxu0 %vm947_vm1, %v920_v3  ;;  %3300 = vmatmul.msk.f32.vlgmr.msra.gmra.mxu1 %vm947_vm1, %v921_v4  ;;  %s5243_s28 = sld [smem:[#allocation49_spill]]  ;;  %s911_s11 = scalar_lea.vmem [#allocation23], %s4549_s5 }
  0x90   : > { %1030 = vmatpush.msrb.mxu1 %v1000_v5  ;;  %v3620_v11 = vld [vmem:[%s5239_s17] ss:$0 sm:$0xff]  ;;  %s5255_s10 = sld [smem:[#allocation52_spill]]  ;;  %s3046_s16 = sshll.u32 %s911_s11, 4  ;;  %s3047_s16 = int_to_ptr.vmem [resolvable:$true] %s3046_s16 }
  0x92   : > { %1031 = vmatpush.msrb.mxu1 %v999_v8  ;;  %s917_s12 = scalar_lea.vmem %s5240_s13, %s5263_s19  ;;  %s4232_s13 = smov 16  }
  0x93   : > { %v928_v37 = vld [vmem:[%s917_s12] sm:$0x1]  ;;  %v929_v40 = vld [vmem:[%s917_s12 + $0x1] sm:$0x1]  ;;  %v930_v51 = vld [vmem:[%s917_s12 + $0x2] sm:$0x1] }
  0x94   : > { %1032 = vmatpush.msrb.mxu1 %v998_v9  ;;  %v3294_v38 = vadd.f32 -1.0, %v928_v37  ;;  %v3295_v42 = vadd.f32 -1.0, %v929_v40  ;;  %v3296_v54 = vadd.f32 -1.0, %v930_v51  ;;  %v931_v56 = vld [vmem:[%s917_s12 + $0x3] sm:$0x1] }
  0x95   : > { %v3297_v58 = vadd.f32 -1.0, %v931_v56  ;;  %v1384_v56 = vld [vmem:[#allocation11 + $0x18] sm:$0xff] }
  0x96   : > { %1033 = vmatpush.msrb.mxu1 %v997_v10  ;;  %v936_v39 = vmul.f32 1e+09, %v3294_v38  ;;  %v937_v46 = vmul.f32 1e+09, %v3295_v42  ;;  %v938_v55 = vmul.f32 1e+09, %v3296_v54 }
  0x97   : > { %3301 = vmatmul.msk.f32.gmra.mxu1 %vm947_vm1, %v922_v6  ;;  %v939_v62 = vmul.f32 1e+09, %v3297_v58  ;;  %v1324_v54 = vld [vmem:[#allocation10] sm:$0xff] }
  0x98   : > { %v4653_v41 = vperm.slane %v936_v39, 0  ;;  %v4657_v48 = vperm.slane %v937_v46, 0  ;;  %v4661_v57 = vperm.slane %v938_v55, 0  ;;  %v1326_v46 = vld [vmem:[#allocation10 + $0x10] sm:$0xff] }
  0x99   : > { %v4665_v0 = vperm.slane %v939_v62, 0  ;;  %v1382_v62 = vld [vmem:[#allocation11 + $0x8] sm:$0xff] }
  0x9f   : > { %3302 = vmatmul.msk.f32.gmra.mxu1 %vm947_vm1, %v923_v7 }
 0x10c   : > { %v981_v12 = vpop.f32.mrf.mxu0  ;;  %v984_v13 = vpop.f32.mrf.mxu1 }
 0x10d   : > { %v4598_v14 = vadd.f32 %v3620_v11, %v981_v12  ;;  %v4604_v16 = vadd.f32 %v3620_v11, %v984_v13 }
 0x10f   : > { %v993_v15 = vmax.f32 %v4598_v14, 0.0  ;;  %v994_v18 = vmax.f32 %v4604_v16, 0.0  ;;  %v1435_v16 = vld [vmem:[#allocation13 + $0x8] sm:$0xff] }
 0x111   : > { %3303 = vmatmul.msk.f32.vlgmr.msrb.gmra.mxu1 %vm1005_vm2, %v993_v15 }
 0x114   : > { %v987_v17 = vpop.f32.mrf.mxu1 }
 0x115   : > { %v4610_v19 = vadd.f32 %v3620_v11, %v987_v17 }
 0x117   : > { %v995_v20 = vmax.f32 %v4610_v19, 0.0  ;;  %v3623_v19 = vld [vmem:[%s5242_s1] ss:$0 sm:$0xff] }
 0x119   : > { %3304 = vmatmul.msk.f32.gmra.mxu1 %vm1005_vm2, %v994_v18 }
 0x11c   : > { %v990_v21 = vpop.f32.mrf.mxu1 }
 0x11d   : > { %v4616_v22 = vadd.f32 %v3620_v11, %v990_v21 }
 0x11f   : > { %v996_v23 = vmax.f32 %v4616_v22, 0.0  ;;  %v1495_v22 = vld [vmem:[#allocation8 + $0x38] sm:$0xff] }
 0x120   : > { %1525 = vmatpush.msra.mxu1 %v1495_v22 }
 0x121   : > { %3305 = vmatmul.msk.f32.gmra.mxu1 %vm1005_vm2, %v995_v20 }
 0x129   : > { %3306 = vmatmul.msk.f32.gmra.mxu1 %vm1005_vm2, %v996_v23 }
 0x18e   : > { %v1035_v25 = vpop.f32.mrf.mxu1 }
 0x18f   : > { %v4625_v26 = vadd.f32 %v3621_v24, %v1035_v25 }
 0x191   : > { %1048 = vrot.lane.b32.xlu0 %v4625_v26, %s4230_s22 }
 0x196   : > { %v1038_v27 = vpop.f32.mrf.mxu1 }
 0x197   : > { %v1039_v28 = vadd.f32 %v3621_v24, %v1038_v27 }
 0x199   : > { %1075 = vrot.lane.b32.xlu0 %v1039_v28, %s4230_s22 }
 0x19e   : > { %v1041_v29 = vpop.f32.mrf.mxu1 }
 0x19f   : > { %v4630_v30 = vadd.f32 %v3621_v24, %v1041_v29 }
 0x1a1   : > { %1102 = vrot.lane.b32.xlu1 %v4630_v30, %s4230_s22 }
 0x1a6   : > { %v1044_v31 = vpop.f32.mrf.mxu1 }
 0x1a7   : > { %v4634_v32 = vadd.f32 %v3621_v24, %v1044_v31 }
 0x1a9   : > { %1129 = vrot.lane.b32.xlu1 %v4634_v32, %s4230_s22 }
 0x203   : > { %v1049_v33 = vpop.permute.xlu0 %1048 }
 0x204   : > { %3307 = vmatpush.xpose.msk.msrb.mxu0 %vm1005_vm2, %v1049_v33 }
 0x207   : > { %3308 = vmatmul.msk.f32.vlgmr.msrb.gmra.mxu0 %vm1005_vm2, %v4625_v26 }
 0x20b   : > { %v1076_v34 = vpop.permute.xlu0 %1075 }
 0x20c   : > { %3309 = vmatpush.xpose.msk.msra.mxu0 %vm1005_vm2, %v1076_v34 }
 0x20f   : > { %3310 = vmatmul.msk.f32.vlgmr.msra.gmra.mxu0 %vm1005_vm2, %v1039_v28 }
 0x213   : > { %v1103_v35 = vpop.permute.xlu1 %1102 }
 0x214   : > { %3311 = vmatpush.xpose.msk.msra.mxu2 %vm1005_vm2, %v1103_v35 }
 0x217   : > { %3312 = vmatmul.msk.f32.vlgmr.msra.gmra.mxu2 %vm1005_vm2, %v4630_v30 }
 0x21b   : > { %v1130_v36 = vpop.permute.xlu1 %1129 }
 0x21c   : > { %3313 = vmatpush.xpose.msk.msra.mxu3 %vm1005_vm2, %v1130_v36 }
 0x21f   : > { %3314 = vmatmul.msk.f32.vlgmr.msra.gmra.mxu3 %vm1005_vm2, %v4634_v32 }
 0x284   : > { %v1071_v43 = vpop.f32.mrf.mxu0 }
 0x285   : > { %v1155_v44 = vmul.f32 0.17677669, %v1071_v43  ;;  %v1327_v43 = vld [vmem:[#allocation10 + $0x18] sm:$0xff] }
 0x287   : > { %v1171_v45 = vadd.f32 %v4653_v41, %v1155_v44 }
 0x289   : > { %v1176_v47 = vsel %vm1175_vm3, %v1171_v45, -inf }
 0x28a   : > { %1177 = vmax.xlane.f32.xlu2 %v1176_v47 }
 0x28c   : > { %v1098_v49 = vpop.f32.mrf.mxu0 }
 0x28d   : > { %v1156_v50 = vmul.f32 0.17677669, %v1098_v49 }
 0x28f   : > { %v1172_v52 = vadd.f32 %v4657_v48, %v1156_v50 }
 0x291   : > { %v1179_v53 = vsel %vm1175_vm3, %v1172_v52, -inf }
 0x292   : > { %1180 = vmax.xlane.f32.xlu2 %v1179_v53 }
 0x29a   : > { %v1125_v59 = vpop.f32.mrf.mxu2 }
 0x29b   : > { %v1157_v60 = vmul.f32 0.17677669, %v1125_v59 }
 0x29d   : > { %v1173_v61 = vadd.f32 %v4661_v57, %v1157_v60 }
 0x29f   : > { %v1182_v63 = vsel %vm1175_vm3, %v1173_v61, -inf }
 0x2a0   : > { %1183 = vmax.xlane.f32.xlu0 %v1182_v63  ;;  %v1381_v63 = vld [vmem:[#allocation11] sm:$0xff] }
 0x2a2   : > { %v1152_v1 = vpop.f32.mrf.mxu3 }
 0x2a3   : > { %v1158_v2 = vmul.f32 0.17677669, %v1152_v1  ;;  %v3622_v1 = vld [vmem:[%s5241_s18] ss:$0 sm:$0xff] }
 0x2a5   : > { %v1174_v3 = vadd.f32 %v4665_v0, %v1158_v2 }
 0x2a7   : > { %v1185_v4 = vsel %vm1175_vm3, %v1174_v3, -inf }
 0x2a8   : > { %1186 = vmax.xlane.f32.xlu1 %v1185_v4 }
 0x2aa   : > { %1220 = vrot.lane.b32.xlu2 %v4625_v26, %s4231_s8 }
 0x2b2   : > { %1246 = vrot.lane.b32.xlu2 %v1039_v28, %s4231_s8 }
 0x2fd   : > { %v1178_v5 = vpop.xlane.xlu2 %1177 }
 0x2fe   : > { %v1188_v6 = vsub.f32 %v1171_v45, %v1178_v5  ;;  %v1437_v5 = vld [vmem:[#allocation13 + $0x18] sm:$0xff] }
 0x2ff   : > { %1462 = vmatpush.msrb.mxu0 %v1437_v5 }
 0x300   : > { %v1192_v7 = vmul.f32 1.442695, %v1188_v6 }
 0x302   : > { %3641 = vpow2.f32 %v1192_v7 }
 0x305   : > { %v1181_v8 = vpop.xlane.xlu2 %1180 }
 0x306   : > { %v1189_v9 = vsub.f32 %v1172_v52, %v1181_v8 }
 0x308   : > { %v3642_v10 = vpop.eup %3641  ;;  %v1194_v11 = vmul.f32 1.442695, %v1189_v9 }
 0x309   : > { %v1200_v12 = vsel %vm1175_vm3, %v3642_v10, 0.0 }
 0x30a   : > { %3643 = vpow2.f32 %v1194_v11  ;;  %1201 = vadd.xlane.f32.xlu2 %v1200_v12 }
 0x30d   : > { %v1221_v13 = vpop.permute.xlu2 %1220 }
 0x30e   : > { %1241 = vmatpush.msrb.mxu2 %v1221_v13  ;;  %v1436_v13 = vld [vmem:[#allocation13 + $0x10] sm:$0xff] }
 0x30f   : > { %1463 = vmatpush.msrb.mxu0 %v1436_v13 }
 0x310   : > { %v3644_v17 = vpop.eup %3643 }
 0x311   : > { %v1203_v21 = vsel %vm1175_vm3, %v3644_v17, 0.0  ;;  %1464 = vmatpush.msrb.mxu0 %v1435_v16 }
 0x312   : > { %1204 = vadd.xlane.f32.xlu2 %v1203_v21 }
 0x313   : > { %v1184_v24 = vpop.xlane.xlu0 %1183 }
 0x314   : > { %v1190_v25 = vsub.f32 %v1173_v61, %v1184_v24  ;;  %v1383_v61 = vld [vmem:[#allocation11 + $0x10] sm:$0xff] }
 0x315   : > { %v1247_v26 = vpop.permute.xlu2 %1246 }
 0x316   : > { %v1196_v27 = vmul.f32 1.442695, %v1190_v25  ;;  %1267 = vmatpush.msrb.mxu3 %v1247_v26 }
 0x318   : > { %3645 = vpow2.f32 %v1196_v27 }
 0x31b   : > { %v1187_v28 = vpop.xlane.xlu1 %1186 }
 0x31c   : > { %v1191_v29 = vsub.f32 %v1174_v3, %v1187_v28 }
 0x31e   : > { %v3646_v31 = vpop.eup %3645  ;;  %v1198_v33 = vmul.f32 1.442695, %v1191_v29 }
 0x31f   : > { %v1206_v34 = vsel %vm1175_vm3, %v3646_v31, 0.0 }
 0x320   : > { %3647 = vpow2.f32 %v1198_v33  ;;  %1207 = vadd.xlane.f32.xlu0 %v1206_v34  ;;  %v1494_v34 = vld [vmem:[#allocation8 + $0x30] sm:$0xff] }
 0x321   : > { %1526 = vmatpush.msra.mxu1 %v1494_v34 }
 0x326   : > { %v3648_v35 = vpop.eup %3647 }
 0x327   : > { %v1209_v36 = vsel %vm1175_vm3, %v3648_v35, 0.0 }
 0x328   : > { %1210 = vadd.xlane.f32.xlu1 %v1209_v36  ;;  %v1492_v36 = vld [vmem:[#allocation8 + $0x20] sm:$0xff] }
 0x32a   : > { %1272 = vrot.lane.b32.xlu2 %v4630_v30, %s4231_s8  ;;  %v1325_v30 = vld [vmem:[#allocation10 + $0x8] sm:$0xff] }
 0x334   : > { %1298 = vrot.lane.b32.xlu0 %v4634_v32, %s4231_s8 }
 0x37d   : > { %v1202_v37 = vpop.xlane.xlu2 %1201 }
 0x37e   : > { %3649 = vrcp.f32 %v1202_v37  ;;  %v3624_v37 = vld [vmem:[#allocation14] ss:$0 sm:$0xff] }
 0x384   : > { %v3650_v38 = vpop.eup %3649 }
 0x385   : > { %v1205_v39 = vpop.xlane.xlu2 %1204  ;;  %v1216_v40 = vmul.f32 %v3650_v38, %v3642_v10 }
 0x386   : > { %3651 = vrcp.f32 %v1205_v39 }
 0x387   : > { %3315 = vmatmul.msk.f32.vlgmr.msrb.gmra.mxu2 %vm1175_vm3, %v1216_v40 }
 0x38c   : > { %v3652_v42 = vpop.eup %3651 }
 0x38d   : > { %v1273_v44 = vpop.permute.xlu2 %1272  ;;  %v1217_v45 = vmul.f32 %v3652_v42, %v3644_v17 }
 0x38e   : > { %1293 = vmatpush.msra.mxu2 %v1273_v44 }
 0x38f   : > { %3316 = vmatmul.msk.f32.vlgmr.msrb.gmra.mxu3 %vm1175_vm3, %v1217_v45 }
 0x390   : > { %1352 = vmatpush.msrb.mxu2 %v1327_v43 }
 0x392   : > { %1353 = vmatpush.msrb.mxu2 %v1326_v46 }
 0x393   : > { %v1208_v32 = vpop.xlane.xlu0 %1207 }
 0x394   : > { %1354 = vmatpush.msrb.mxu2 %v1325_v30  ;;  %3653 = vrcp.f32 %v1208_v32 }
 0x396   : > { %1355 = vmatpush.msrb.mxu2 %v1324_v54 }
 0x39a   : > { %v3654_v47 = vpop.eup %3653 }
 0x39b   : > { %v1218_v49 = vmul.f32 %v3654_v47, %v3646_v31  ;;  %v1211_v50 = vpop.xlane.xlu1 %1210 }
 0x39c   : > { %3655 = vrcp.f32 %v1211_v50  ;;  %v3625_v50 = vld [vmem:[%s5169_s6 + $0x1] ss:$0 sm:$0xff] }
 0x39d   : > { %3317 = vmatmul.msk.f32.vlgmr.msra.gmra.mxu2 %vm1175_vm3, %v1218_v49 }
 0x3a2   : > { %v3656_v51 = vpop.eup %3655 }
 0x3a3   : > { %v1219_v52 = vmul.f32 %v3656_v51, %v3648_v35  ;;  %v1493_v35 = vld [vmem:[#allocation8 + $0x28] sm:$0xff] }
 0x3a4   : > { %1527 = vmatpush.msra.mxu1 %v1493_v35 }
 0x3a6   : > { %v1299_v53 = vpop.permute.xlu0 %1298  ;;  %1528 = vmatpush.msra.mxu1 %v1492_v36 }
 0x3a7   : > { %1319 = vmatpush.msra.mxu3 %v1299_v53 }
 0x3a8   : > { %3318 = vmatmul.msk.f32.vlgmr.msra.gmra.mxu3 %vm1175_vm3, %v1219_v52 }
 0x3a9   : > { %1413 = vmatpush.msrb.mxu3 %v1384_v56 }
 0x3ab   : > { %1414 = vmatpush.msrb.mxu3 %v1383_v61 }
 0x3ad   : > { %1415 = vmatpush.msrb.mxu3 %v1382_v62 }
 0x3af   : > { %1416 = vmatpush.msrb.mxu3 %v1381_v63 }
 0x40a   : > { %v1243_v55 = vpop.f32.mrf.mxu2 }
 0x40b   : > { %3319 = vmatmul.msk.f32.vlgmr.msrb.gmra.mxu2 %vm1005_vm2, %v1243_v55 }
 0x412   : > { %v1269_v58 = vpop.f32.mrf.mxu3 }
 0x413   : > { %3320 = vmatmul.msk.f32.gmra.mxu2 %vm1005_vm2, %v1269_v58 }
 0x420   : > { %v1295_v59 = vpop.f32.mrf.mxu2 }
 0x421   : > { %3321 = vmatmul.msk.f32.gmra.mxu2 %vm1005_vm2, %v1295_v59 }
 0x42b   : > { %v1321_v60 = vpop.f32.mrf.mxu3 }
 0x42c   : > { %3322 = vmatmul.msk.f32.gmra.mxu2 %vm1005_vm2, %v1321_v60 }
 0x48e   : > { %v1357_v2 = vpop.f32.mrf.mxu2 }
 0x48f   : > { %v1369_v3 = vadd.f32 %v1357_v2, %v993_v15 }
 0x491   : > { %v1377_v4 = vadd.f32 %v3622_v1, %v1369_v3 }
 0x493   : > { %3323 = vmatmul.msk.f32.vlgmr.msrb.gmra.mxu3 %vm1005_vm2, %v1377_v4 }
 0x496   : > { %v1360_v6 = vpop.f32.mrf.mxu2 }
 0x497   : > { %v1370_v7 = vadd.f32 %v1360_v6, %v994_v18  ;;  %v1434_v18 = vld [vmem:[#allocation13] sm:$0xff] }
 0x498   : > { %1465 = vmatpush.msrb.mxu0 %v1434_v18 }
 0x499   : > { %v1378_v8 = vadd.f32 %v3622_v1, %v1370_v7 }
 0x49b   : > { %3324 = vmatmul.msk.f32.gmra.mxu3 %vm1005_vm2, %v1378_v8 }
 0x4a4   : > { %v1363_v9 = vpop.f32.mrf.mxu2 }
 0x4a5   : > { %v1371_v10 = vadd.f32 %v1363_v9, %v995_v20 }
 0x4a7   : > { %v1379_v11 = vadd.f32 %v3622_v1, %v1371_v10 }
 0x4a9   : > { %3325 = vmatmul.msk.f32.gmra.mxu3 %vm1005_vm2, %v1379_v11 }
 0x4af   : > { %v1366_v14 = vpop.f32.mrf.mxu2 }
 0x4b0   : > { %v1372_v15 = vadd.f32 %v1366_v14, %v996_v23 }
 0x4b2   : > { %v1380_v12 = vadd.f32 %v3622_v1, %v1372_v15 }
 0x4b4   : > { %3326 = vmatmul.msk.f32.gmra.mxu3 %vm1005_vm2, %v1380_v12 }
 0x516   : > { %v1418_v20 = vpop.f32.mrf.mxu3 }
 0x517   : > { %v1419_v17 = vadd.f32 %v3623_v19, %v1418_v20 }
 0x519   : > { %v1430_v21 = vmax.f32 %v1419_v17, 0.0 }
 0x51b   : > { %3327 = vmatmul.msk.f32.vlgmr.msrb.gmra.mxu0 %vm1005_vm2, %v1430_v21 }
 0x51e   : > { %v1421_v23 = vpop.f32.mrf.mxu3 }
 0x51f   : > { %v1422_v24 = vadd.f32 %v3623_v19, %v1421_v23 }
 0x521   : > { %v1431_v25 = vmax.f32 %v1422_v24, 0.0 }
 0x523   : > { %3328 = vmatmul.msk.f32.gmra.mxu0 %vm1005_vm2, %v1431_v25 }
 0x52c   : > { %v1424_v26 = vpop.f32.mrf.mxu3 }
 0x52d   : > { %v1425_v27 = vadd.f32 %v3623_v19, %v1424_v26 }
 0x52f   : > { %v1432_v28 = vmax.f32 %v1425_v27, 0.0 }
 0x531   : > { %3329 = vmatmul.msk.f32.gmra.mxu0 %vm1005_vm2, %v1432_v28 }
 0x537   : > { %v1427_v29 = vpop.f32.mrf.mxu3 }
 0x538   : > { %v1428_v31 = vadd.f32 %v3623_v19, %v1427_v29 }
 0x53a   : > { %v1433_v33 = vmax.f32 %v1428_v31, 0.0 }
 0x53c   : > { %3330 = vmatmul.msk.f32.gmra.mxu0 %vm1005_vm2, %v1433_v33 }
 0x598   : > { %v1467_v38 = vpop.f32.mrf.mxu0 }
 0x599   : > { %v1479_v39 = vadd.f32 %v1467_v38, %v1377_v4 }
 0x59b   : > { %v4710_v40 = vadd.f32 %v3624_v37, %v1479_v39 }
 0x59d   : > { %3332 = vmatmul.msk.f32.vlgmr.msra.gmra.mxu1 %vm1005_vm2, %v4710_v40 }
 0x5a0   : > { %v1470_v42 = vpop.f32.mrf.mxu0 }
 0x5a1   : > { %v1480_v43 = vadd.f32 %v1470_v42, %v1378_v8 }
 0x5a3   : > { %v4714_v44 = vadd.f32 %v3624_v37, %v1480_v43 }
 0x5a5   : > { %3333 = vmatmul.msk.f32.gmra.mxu1 %vm1005_vm2, %v4714_v44 }
 0x5ae   : > { %v1473_v45 = vpop.f32.mrf.mxu0 }
 0x5af   : > { %v1481_v46 = vadd.f32 %v1473_v45, %v1379_v11 }
 0x5b1   : > { %v4718_v30 = vadd.f32 %v3624_v37, %v1481_v46 }
 0x5b3   : > { %3334 = vmatmul.msk.f32.gmra.mxu1 %vm1005_vm2, %v4718_v30 }
 0x5b9   : > { %v1476_v32 = vpop.f32.mrf.mxu0 }
 0x5ba   : > { %v1482_v47 = vadd.f32 %v1476_v32, %v1380_v12 }
 0x5bc   : > { %v4722_v49 = vadd.f32 %v3624_v37, %v1482_v47  ;;  %v1810_v47 = vld [vmem:[#allocation10 + $0x38] sm:$0xff] }
 0x5be   : > { %3335 = vmatmul.msk.f32.gmra.mxu1 %vm1005_vm2, %v4722_v49 }
 0x61a   : > { %v1530_v51 = vpop.f32.mrf.mxu1 }
 0x61b   : > { %v1531_v52 = vadd.f32 %v3625_v50, %v1530_v51  ;;  %v1808_v51 = vld [vmem:[#allocation10 + $0x28] sm:$0xff] }
 0x61d   : > { %1543 = vrot.lane.b32.xlu1 %v1531_v52, %s4230_s22 }
 0x622   : > { %v1533_v53 = vpop.f32.mrf.mxu1 }
 0x623   : > { %v4730_v54 = vadd.f32 %v3625_v50, %v1533_v53 }
 0x625   : > { %1570 = vrot.lane.b32.xlu2 %v4730_v54, %s4230_s22 }
 0x630   : > { %v1536_v55 = vpop.f32.mrf.mxu1 }
 0x631   : > { %v4734_v56 = vadd.f32 %v3625_v50, %v1536_v55 }
 0x633   : > { %1597 = vrot.lane.b32.xlu2 %v4734_v56, %s4230_s22 }
 0x63b   : > { %v1539_v58 = vpop.f32.mrf.mxu1 }
 0x63c   : > { %v1540_v59 = vadd.f32 %v3625_v50, %v1539_v58  ;;  %v1809_v50 = vld [vmem:[#allocation10 + $0x30] sm:$0xff] }
 0x63e   : > { %1624 = vrot.lane.b32.xlu0 %v1540_v59, %s4230_s22 }
 0x67f   : > { %v1571_v60 = vpop.permute.xlu2 %1570 }
 0x680   : > { %3338 = vmatpush.xpose.msk.msra.mxu3 %vm1005_vm2, %v1571_v60 }
 0x683   : > { %3339 = vmatmul.msk.f32.vlgmr.msra.gmra.mxu3 %vm1005_vm2, %v4730_v54 }
 0x68d   : > { %v1598_v61 = vpop.permute.xlu2 %1597 }
 0x68e   : > { %3340 = vmatpush.xpose.msk.msra.mxu0 %vm1005_vm2, %v1598_v61 }
 0x68f   : > { %v1544_v62 = vpop.permute.xlu1 %1543 }
 0x690   : > { %3336 = vmatpush.xpose.msk.msra.mxu2 %vm1005_vm2, %v1544_v62 }
 0x691   : > { %3341 = vmatmul.msk.f32.vlgmr.msra.gmra.mxu0 %vm1005_vm2, %v4734_v56 }
 0x693   : > { %3337 = vmatmul.msk.f32.vlgmr.msra.gmra.mxu2 %vm1005_vm2, %v1531_v52 }
 0x6b0   : > { %v1625_v63 = vpop.permute.xlu0 %1624 }
 0x6b1   : > { %3342 = vmatpush.xpose.msk.msrb.mxu1 %vm1005_vm2, %v1625_v63  ;;  %v1807_v63 = vld [vmem:[#allocation10 + $0x20] sm:$0xff] }
 0x6b4   : > { %3343 = vmatmul.msk.f32.vlgmr.msrb.gmra.mxu1 %vm1005_vm2, %v1540_v59 }
 0x706   : > { %v1593_v1 = vpop.f32.mrf.mxu3 }
 0x707   : > { %v1651_v2 = vmul.f32 0.17677669, %v1593_v1 }
 0x709   : > { %v1655_v3 = vadd.f32 %v1651_v2, %v4657_v48  ;;  %v1869_v2 = vld [vmem:[#allocation11 + $0x38] sm:$0xff] }
 0x70b   : > { %v1661_v4 = vsel %vm1175_vm3, %v1655_v3, -inf }
 0x70c   : > { %1662 = vmax.xlane.f32.xlu1 %v1661_v4 }
 0x70e   : > { %v1620_v5 = vpop.f32.mrf.mxu0 }
 0x70f   : > { %v1652_v6 = vmul.f32 0.17677669, %v1620_v5 }
 0x711   : > { %v1656_v7 = vadd.f32 %v1652_v6, %v4661_v57  ;;  %v1868_v6 = vld [vmem:[#allocation11 + $0x30] sm:$0xff] }
 0x713   : > { %v1664_v8 = vsel %vm1175_vm3, %v1656_v7, -inf }
 0x714   : > { %1665 = vmax.xlane.f32.xlu0 %v1664_v8  ;;  %v1866_v8 = vld [vmem:[#allocation11 + $0x20] sm:$0xff] }
 0x716   : > { %v1566_v9 = vpop.f32.mrf.mxu2 }
 0x717   : > { %v1650_v10 = vmul.f32 0.17677669, %v1566_v9  ;;  %v3626_v9 = vld [vmem:[%s5241_s18 + $0x1] ss:$0 sm:$0xff] }
 0x719   : > { %v1654_v11 = vadd.f32 %v1650_v10, %v4653_v41 }
 0x71b   : > { %v1658_v14 = vsel %vm1175_vm3, %v1654_v11, -inf }
 0x71c   : > { %1659 = vmax.xlane.f32.xlu2 %v1658_v14 }
 0x731   : > { %v1647_v15 = vpop.f32.mrf.mxu1 }
 0x732   : > { %v1653_v12 = vmul.f32 0.17677669, %v1647_v15  ;;  %v1924_v15 = vld [vmem:[#allocation13 + $0x38] sm:$0xff] }
 0x734   : > { %v1657_v13 = vadd.f32 %v1653_v12, %v4665_v0 }
 0x736   : > { %v1667_v16 = vsel %vm1175_vm3, %v1657_v13, -inf }
 0x737   : > { %1668 = vmax.xlane.f32.xlu2 %v1667_v16 }
 0x74f   : > { %1702 = vrot.lane.b32.xlu2 %v1531_v52, %s4231_s8 }
 0x757   : > { %1780 = vrot.lane.b32.xlu2 %v1540_v59, %s4231_s8 }
 0x77f   : > { %v1663_v18 = vpop.xlane.xlu1 %1662 }
 0x780   : > { %v1671_v19 = vsub.f32 %v1655_v3, %v1663_v18 }
 0x782   : > { %v1676_v20 = vmul.f32 1.442695, %v1671_v19 }
 0x784   : > { %3657 = vpow2.f32 %v1676_v20 }
 0x787   : > { %v1666_v17 = vpop.xlane.xlu0 %1665 }
 0x788   : > { %v1672_v21 = vsub.f32 %v1656_v7, %v1666_v17  ;;  %v1867_v7 = vld [vmem:[#allocation11 + $0x28] sm:$0xff] }
 0x78a   : > { %v3658_v22 = vpop.eup %3657  ;;  %v1678_v23 = vmul.f32 1.442695, %v1672_v21 }
 0x78b   : > { %v1685_v24 = vsel %vm1175_vm3, %v3658_v22, 0.0 }
 0x78c   : > { %3659 = vpow2.f32 %v1678_v23  ;;  %1686 = vadd.xlane.f32.xlu0 %v1685_v24  ;;  %v1922_v23 = vld [vmem:[#allocation13 + $0x28] sm:$0xff] }
 0x78d   : > { %v3627_v24 = vld [vmem:[%s5242_s1 + $0x1] ss:$0 sm:$0xff] }
 0x78f   : > { %v1660_v25 = vpop.xlane.xlu2 %1659 }
 0x790   : > { %v1670_v26 = vsub.f32 %v1654_v11, %v1660_v25 }
 0x792   : > { %v3660_v27 = vpop.eup %3659  ;;  %v1674_v28 = vmul.f32 1.442695, %v1670_v26 }
 0x793   : > { %v1688_v29 = vsel %vm1175_vm3, %v3660_v27, 0.0 }
 0x794   : > { %3661 = vpow2.f32 %v1674_v28  ;;  %1689 = vadd.xlane.f32.xlu0 %v1688_v29 }
 0x79a   : > { %v3662_v31 = vpop.eup %3661 }
 0x79b   : > { %v1682_v33 = vsel %vm1175_vm3, %v3662_v31, 0.0 }
 0x79c   : > { %1683 = vadd.xlane.f32.xlu1 %v1682_v33 }
 0x7aa   : > { %v1669_v34 = vpop.xlane.xlu2 %1668 }
 0x7ab   : > { %v1673_v35 = vsub.f32 %v1657_v13, %v1669_v34 }
 0x7ad   : > { %v1680_v36 = vmul.f32 1.442695, %v1673_v35 }
 0x7af   : > { %3663 = vpow2.f32 %v1680_v36 }
 0x7b2   : > { %v1703_v37 = vpop.permute.xlu2 %1702 }
 0x7b3   : > { %1723 = vmatpush.msrb.mxu2 %v1703_v37 }
 0x7b5   : > { %v3664_v38 = vpop.eup %3663  ;;  %1728 = vrot.lane.b32.xlu1 %v4730_v54, %s4231_s8  ;;  %1835 = vmatpush.msra.mxu2 %v1810_v47 }
 0x7b6   : > { %v1691_v39 = vsel %vm1175_vm3, %v3664_v38, 0.0 }
 0x7b7   : > { %1692 = vadd.xlane.f32.xlu0 %v1691_v39  ;;  %1836 = vmatpush.msra.mxu2 %v1809_v50  ;;  %v1981_v39 = vld [vmem:[#allocation8 + $0x48] sm:$0xff] }
 0x7b9   : > { %1837 = vmatpush.msra.mxu2 %v1808_v51 }
 0x7ba   : > { %v1781_v42 = vpop.permute.xlu2 %1780 }
 0x7bb   : > { %1801 = vmatpush.msra.mxu1 %v1781_v42  ;;  %1838 = vmatpush.msra.mxu2 %v1807_v63  ;;  %v1980_v42 = vld [vmem:[#allocation8 + $0x40] sm:$0xff] }
 0x7cb   : > { %1754 = vrot.lane.b32.xlu0 %v4734_v56, %s4231_s8 }
 0x7ff   : > { %v1687_v32 = vpop.xlane.xlu0 %1686 }
 0x807   : > { %v1690_v52 = vpop.xlane.xlu0 %1689 }
 0x80f   : > { %v1684_v43 = vpop.xlane.xlu1 %1683 }
 0x810   : > { %3665 = vrcp.f32 %v1684_v43  ;;  %v3628_v43 = vld [vmem:[#allocation14 + $0x1] ss:$0 sm:$0xff] }
 0x811   : > { %3667 = vrcp.f32 %v1687_v32 }
 0x816   : > { %v3666_v45 = vpop.eup %3665 }
 0x817   : > { %v1698_v46 = vmul.f32 %v3666_v45, %v3662_v31  ;;  %v3668_v53 = vpop.eup %3667 }
 0x818   : > { %v1699_v54 = vmul.f32 %v3668_v53, %v3658_v22  ;;  %v1923_v22 = vld [vmem:[#allocation13 + $0x30] sm:$0xff] }
 0x819   : > { %3344 = vmatmul.msk.f32.vlgmr.msrb.gmra.mxu2 %vm1175_vm3, %v1698_v46 }
 0x827   : > { %v1729_v55 = vpop.permute.xlu1 %1728 }
 0x828   : > { %1749 = vmatpush.msrb.mxu3 %v1729_v55 }
 0x829   : > { %3345 = vmatmul.msk.f32.vlgmr.msrb.gmra.mxu3 %vm1175_vm3, %v1699_v54 }
 0x82a   : > { %v1693_v56 = vpop.xlane.xlu0 %1692  ;;  %1899 = vmatpush.msra.mxu3 %v1869_v2 }
 0x82b   : > { %3669 = vrcp.f32 %v1693_v56 }
 0x82c   : > { %3671 = vrcp.f32 %v1690_v52  ;;  %1900 = vmatpush.msra.mxu3 %v1868_v6 }
 0x82e   : > { %1901 = vmatpush.msra.mxu3 %v1867_v7 }
 0x830   : > { %1902 = vmatpush.msra.mxu3 %v1866_v8 }
 0x831   : > { %v3670_v58 = vpop.eup %3669 }
 0x832   : > { %v1701_v59 = vmul.f32 %v3670_v58, %v3664_v38  ;;  %v3672_v60 = vpop.eup %3671  ;;  %v1982_v38 = vld [vmem:[#allocation8 + $0x50] sm:$0xff] }
 0x833   : > { %v1700_v61 = vmul.f32 %v3672_v60, %v3660_v27  ;;  %v1983_v27 = vld [vmem:[#allocation8 + $0x58] sm:$0xff] }
 0x834   : > { %3347 = vmatmul.msk.f32.vlgmr.msra.gmra.mxu1 %vm1175_vm3, %v1701_v59  ;;  %v3629_v59 = vld [vmem:[%s5169_s6 + $0x2] ss:$0 sm:$0xff] }
 0x835   : > { %2013 = vmatpush.msrb.mxu1 %v1983_v27 }
 0x837   : > { %2014 = vmatpush.msrb.mxu1 %v1982_v38 }
 0x839   : > { %2015 = vmatpush.msrb.mxu1 %v1981_v39 }
 0x83b   : > { %2016 = vmatpush.msrb.mxu1 %v1980_v42 }
 0x83d   : > { %v1755_v62 = vpop.permute.xlu0 %1754 }
 0x83e   : > { %1775 = vmatpush.msrb.mxu0 %v1755_v62 }
 0x83f   : > { %3346 = vmatmul.msk.f32.vlgmr.msrb.gmra.mxu0 %vm1175_vm3, %v1700_v61 }
 0x840   : > { %1949 = vmatpush.msra.mxu0 %v1924_v15 }
 0x842   : > { %1950 = vmatpush.msra.mxu0 %v1923_v22 }
 0x844   : > { %1951 = vmatpush.msra.mxu0 %v1922_v23 }
 0x89c   : > { %v1725_v1 = vpop.f32.mrf.mxu2 }
 0x89d   : > { %3348 = vmatmul.msk.f32.vlgmr.msra.gmra.mxu2 %vm1005_vm2, %v1725_v1 }
 0x8ac   : > { %v1751_v3 = vpop.f32.mrf.mxu3 }
 0x8ad   : > { %3349 = vmatmul.msk.f32.gmra.mxu2 %vm1005_vm2, %v1751_v3 }
 0x8b1   : > { %v1803_v5 = vpop.f32.mrf.mxu1 }
 0x8bc   : > { %v1777_v4 = vpop.f32.mrf.mxu0 }
 0x8bd   : > { %3350 = vmatmul.msk.f32.gmra.mxu2 %vm1005_vm2, %v1777_v4 }
 0x8c5   : > { %3351 = vmatmul.msk.f32.gmra.mxu2 %vm1005_vm2, %v1803_v5 }
 0x920   : > { %v1840_v10 = vpop.f32.mrf.mxu2 }
 0x921   : > { %v1852_v11 = vadd.f32 %v1840_v10, %v4710_v40 }
 0x923   : > { %v1861_v14 = vadd.f32 %v3626_v9, %v1852_v11 }
 0x925   : > { %3354 = vmatmul.msk.f32.vlgmr.msra.gmra.mxu3 %vm1005_vm2, %v1861_v14 }
 0x930   : > { %v1843_v12 = vpop.f32.mrf.mxu2 }
 0x931   : > { %v1853_v13 = vadd.f32 %v1843_v12, %v4714_v44  ;;  %v1921_v44 = vld [vmem:[#allocation13 + $0x20] sm:$0xff] }
 0x932   : > { %1952 = vmatpush.msra.mxu0 %v1921_v44 }
 0x933   : > { %v1862_v16 = vadd.f32 %v3626_v9, %v1853_v13 }
 0x935   : > { %3355 = vmatmul.msk.f32.gmra.mxu3 %vm1005_vm2, %v1862_v16 }
 0x940   : > { %v1846_v18 = vpop.f32.mrf.mxu2 }
 0x941   : > { %v1854_v19 = vadd.f32 %v1846_v18, %v4718_v30 }
 0x943   : > { %v1863_v20 = vadd.f32 %v3626_v9, %v1854_v19 }
 0x945   : > { %3356 = vmatmul.msk.f32.gmra.mxu3 %vm1005_vm2, %v1863_v20 }
 0x948   : > { %v1849_v17 = vpop.f32.mrf.mxu2 }
 0x949   : > { %v1855_v40 = vadd.f32 %v1849_v17, %v4722_v49 }
 0x94b   : > { %v1864_v21 = vadd.f32 %v3626_v9, %v1855_v40 }
 0x94d   : > { %3357 = vmatmul.msk.f32.gmra.mxu3 %vm1005_vm2, %v1864_v21 }
 0x9a8   : > { %v1904_v30 = vpop.f32.mrf.mxu3 }
 0x9a9   : > { %v1905_v25 = vadd.f32 %v3627_v24, %v1904_v30 }
 0x9ab   : > { %v1916_v26 = vmax.f32 %v1905_v25, 0.0 }
 0x9ad   : > { %3358 = vmatmul.msk.f32.vlgmr.msra.gmra.mxu0 %vm1005_vm2, %v1916_v26 }
 0x9b8   : > { %v1907_v49 = vpop.f32.mrf.mxu3 }
 0x9b9   : > { %v1908_v28 = vadd.f32 %v3627_v24, %v1907_v49 }
 0x9bb   : > { %v1917_v29 = vmax.f32 %v1908_v28, 0.0 }
 0x9bd   : > { %3359 = vmatmul.msk.f32.gmra.mxu0 %vm1005_vm2, %v1917_v29 }
 0x9c8   : > { %v1910_v31 = vpop.f32.mrf.mxu3 }
 0x9c9   : > { %v1911_v33 = vadd.f32 %v3627_v24, %v1910_v31 }
 0x9cb   : > { %v1918_v34 = vmax.f32 %v1911_v33, 0.0 }
 0x9cd   : > { %3360 = vmatmul.msk.f32.gmra.mxu0 %vm1005_vm2, %v1918_v34 }
 0x9d0   : > { %v1913_v35 = vpop.f32.mrf.mxu3 }
 0x9d1   : > { %v1914_v36 = vadd.f32 %v3627_v24, %v1913_v35 }
 0x9d3   : > { %v1919_v37 = vmax.f32 %v1914_v36, 0.0 }
 0x9d5   : > { %3361 = vmatmul.msk.f32.gmra.mxu0 %vm1005_vm2, %v1919_v37 }
 0xa2a   : > { %v1954_v45 = vpop.f32.mrf.mxu0 }
 0xa2b   : > { %v1966_v46 = vadd.f32 %v1954_v45, %v1861_v14 }
 0xa2d   : > { %v4793_v32 = vadd.f32 %v3628_v43, %v1966_v46 }
 0xa2f   : > { %3363 = vmatmul.msk.f32.vlgmr.msrb.gmra.mxu1 %vm1005_vm2, %v4793_v32 }
 0xa3a   : > { %v1957_v47 = vpop.f32.mrf.mxu0 }
 0xa3b   : > { %v1967_v50 = vadd.f32 %v1957_v47, %v1862_v16 }
 0xa3d   : > { %v4797_v51 = vadd.f32 %v3628_v43, %v1967_v50 }
 0xa3f   : > { %3364 = vmatmul.msk.f32.gmra.mxu1 %vm1005_vm2, %v4797_v51 }
 0xa4a   : > { %v1960_v52 = vpop.f32.mrf.mxu0 }
 0xa4b   : > { %v1968_v53 = vadd.f32 %v1960_v52, %v1863_v20 }
 0xa4d   : > { %v4801_v54 = vadd.f32 %v3628_v43, %v1968_v53 }
 0xa4f   : > { %3365 = vmatmul.msk.f32.gmra.mxu1 %vm1005_vm2, %v4801_v54 }
 0xa52   : > { %v1963_v55 = vpop.f32.mrf.mxu0 }
 0xa53   : > { %v1969_v56 = vadd.f32 %v1963_v55, %v1864_v21 }
 0xa55   : > { %v4805_v58 = vadd.f32 %v3628_v43, %v1969_v56 }
 0xa57   : > { %3366 = vmatmul.msk.f32.gmra.mxu1 %vm1005_vm2, %v4805_v58 }
 0xaac   : > { %v2018_v60 = vpop.f32.mrf.mxu1 }
 0xaad   : > { %v2019_v61 = vadd.f32 %v3629_v59, %v2018_v60 }
 0xaaf   : > { %2031 = vrot.lane.b32.xlu1 %v2019_v61, %s4230_s22 }
 0xabc   : > { %v2021_v62 = vpop.f32.mrf.mxu1 }
 0xabd   : > { %v2022_v63 = vadd.f32 %v3629_v59, %v2021_v62 }
 0xabf   : > { %2058 = vrot.lane.b32.xlu2 %v2022_v63, %s4230_s22  ;;  %v3615_v23 = vpack.i.bf16 %v2022_v63, %v2019_v61 }
 0xacc   : > { %v2024_v1 = vpop.f32.mrf.mxu1 }
 0xacd   : > { %v4814_v2 = vadd.f32 %v3629_v59, %v2024_v1 }
 0xacf   : > { %2085 = vrot.lane.b32.xlu1 %v4814_v2, %s4230_s22 }
 0xad4   : > { %v2027_v3 = vpop.f32.mrf.mxu1 }
 0xad5   : > { %v4818_v4 = vadd.f32 %v3629_v59, %v2027_v3  ;;  %v2298_v3 = vld [vmem:[#allocation10 + $0x58] sm:$0xff] }
 0xad7   : > { %2112 = vrot.lane.b32.xlu2 %v4818_v4, %s4230_s22  ;;  %s5256_s22 = sld [smem:[#allocation53_spill]] }
 0xadd   : > { %s4139_s19 = scalar_lea.hbm %s5256_s22, 64 }
 0xb19   : > { %v2059_v5 = vpop.permute.xlu2 %2058 }
 0xb1a   : > { %3369 = vmatpush.xpose.msk.msrb.mxu3 %vm1005_vm2, %v2059_v5  ;;  %v2296_v5 = vld [vmem:[#allocation10 + $0x48] sm:$0xff] }
 0xb1d   : > { %3370 = vmatmul.msk.f32.vlgmr.msrb.gmra.mxu3 %vm1005_vm2, %v2022_v63 }
 0xb21   : > { %v2032_v6 = vpop.permute.xlu1 %2031 }
 0xb22   : > { %3367 = vmatpush.xpose.msk.msrb.mxu2 %vm1005_vm2, %v2032_v6  ;;  %v2295_v6 = vld [vmem:[#allocation10 + $0x40] sm:$0xff] }
 0xb25   : > { %3368 = vmatmul.msk.f32.vlgmr.msrb.gmra.mxu2 %vm1005_vm2, %v2019_v61 }
 0xb31   : > { %v2113_v7 = vpop.permute.xlu2 %2112 }
 0xb32   : > { %3373 = vmatpush.xpose.msk.msra.mxu1 %vm1005_vm2, %v2113_v7 }
 0xb35   : > { %3374 = vmatmul.msk.f32.vlgmr.msra.gmra.mxu1 %vm1005_vm2, %v4818_v4 }
 0xb41   : > { %v2086_v8 = vpop.permute.xlu1 %2085 }
 0xb42   : > { %3371 = vmatpush.xpose.msk.msrb.mxu0 %vm1005_vm2, %v2086_v8 }
 0xb45   : > { %3372 = vmatmul.msk.f32.vlgmr.msrb.gmra.mxu0 %vm1005_vm2, %v4814_v2 }
 0xba0   : > { %v2081_v9 = vpop.f32.mrf.mxu3 }
 0xba1   : > { %v2139_v10 = vmul.f32 0.17677669, %v2081_v9  ;;  %v2357_v9 = vld [vmem:[#allocation11 + $0x58] sm:$0xff] }
 0xba3   : > { %v2143_v11 = vadd.f32 %v2139_v10, %v4657_v48 }
 0xba5   : > { %v2149_v14 = vsel %vm1175_vm3, %v2143_v11, -inf }
 0xba6   : > { %2150 = vmax.xlane.f32.xlu1 %v2149_v14  ;;  %v2356_v14 = vld [vmem:[#allocation11 + $0x50] sm:$0xff] }
 0xba8   : > { %v2054_v15 = vpop.f32.mrf.mxu2 }
 0xba9   : > { %v2138_v12 = vmul.f32 0.17677669, %v2054_v15  ;;  %v2355_v15 = vld [vmem:[#allocation11 + $0x48] sm:$0xff] }
 0xbab   : > { %v2142_v13 = vadd.f32 %v2138_v12, %v4653_v41  ;;  %v2354_v12 = vld [vmem:[#allocation11 + $0x40] sm:$0xff] }
 0xbad   : > { %v2146_v16 = vsel %vm1175_vm3, %v2142_v13, -inf }
 0xbae   : > { %2147 = vmax.xlane.f32.xlu0 %v2146_v16 }
 0xbb2   : > { %v2135_v18 = vpop.f32.mrf.mxu1 }
 0xbb3   : > { %v2141_v19 = vmul.f32 0.17677669, %v2135_v18 }
 0xbb5   : > { %v2145_v20 = vadd.f32 %v2141_v19, %v4665_v0 }
 0xbb7   : > { %v2155_v17 = vsel %vm1175_vm3, %v2145_v20, -inf }
 0xbb8   : > { %2156 = vmax.xlane.f32.xlu0 %v2155_v17 }
 0xbc2   : > { %v2108_v40 = vpop.f32.mrf.mxu0 }
 0xbc3   : > { %v2140_v21 = vmul.f32 0.17677669, %v2108_v40 }
 0xbc5   : > { %v2144_v48 = vadd.f32 %v2140_v21, %v4661_v57  ;;  %v2412_v21 = vld [vmem:[#allocation13 + $0x58] sm:$0xff] }
 0xbc7   : > { %v2152_v22 = vsel %vm1175_vm3, %v2144_v48, -inf }
 0xbc8   : > { %2153 = vmax.xlane.f32.xlu2 %v2152_v22 }
 0xbcc   : > { %3616 = vrot.lane.b32.xlu0 %v3615_v23, %s4231_s8 }
 0xc19   : > { %v2151_v41 = vpop.xlane.xlu1 %2150 }
 0xc1a   : > { %v2159_v44 = vsub.f32 %v2143_v11, %v2151_v41 }
 0xc1c   : > { %v2164_v24 = vmul.f32 1.442695, %v2159_v44 }
 0xc1e   : > { %3673 = vpow2.f32 %v2164_v24  ;;  %v2410_v24 = vld [vmem:[#allocation13 + $0x48] sm:$0xff] }
 0xc21   : > { %v2148_v30 = vpop.xlane.xlu0 %2147 }
 0xc22   : > { %v2158_v25 = vsub.f32 %v2142_v13, %v2148_v30  ;;  %v3630_v13 = vld [vmem:[%s5241_s18 + $0x2] ss:$0 sm:$0xff]  ;;  %v2409_v30 = vld [vmem:[#allocation13 + $0x40] sm:$0xff] }
 0xc24   : > { %v3674_v0 = vpop.eup %3673  ;;  %v2162_v26 = vmul.f32 1.442695, %v2158_v25 }
 0xc25   : > { %v2173_v27 = vsel %vm1175_vm3, %v3674_v0, 0.0 }
 0xc26   : > { %3675 = vpow2.f32 %v2162_v26  ;;  %2174 = vadd.xlane.f32.xlu2 %v2173_v27 }
 0xc2b   : > { %v2157_v49 = vpop.xlane.xlu0 %2156 }
 0xc2c   : > { %v3676_v57 = vpop.eup %3675  ;;  %v2161_v28 = vsub.f32 %v2145_v20, %v2157_v49 }
 0xc2d   : > { %v2170_v29 = vsel %vm1175_vm3, %v3676_v57, 0.0 }
 0xc2e   : > { %v2168_v31 = vmul.f32 1.442695, %v2161_v28  ;;  %2171 = vadd.xlane.f32.xlu1 %v2170_v29  ;;  %v2520_v28 = vld [vmem:[#allocation16 + $0x38] sm:$0xff] }
 0xc2f   : > { %v2559_v29 = vld [vmem:[#allocation16 + $0x58] sm:$0xff] }
 0xc30   : > { %3677 = vpow2.f32 %v2168_v31  ;;  %v2597_v31 = vld [vmem:[#allocation19 + $0x18] sm:$0xff] }
 0xc36   : > { %v3678_v33 = vpop.eup %3677 }
 0xc37   : > { %v2179_v34 = vsel %vm1175_vm3, %v3678_v33, 0.0 }
 0xc38   : > { %2180 = vadd.xlane.f32.xlu2 %v2179_v34 }
 0xc3b   : > { %v2154_v35 = vpop.xlane.xlu2 %2153 }
 0xc3c   : > { %v2160_v36 = vsub.f32 %v2144_v48, %v2154_v35 }
 0xc3e   : > { %v2166_v37 = vmul.f32 1.442695, %v2160_v36  ;;  %v3617_v38 = vpop.permute.xlu0 %3616 }
 0xc3f   : > { %v3619_v39 = vunpack.i.h.bf16 %v3617_v38  ;;  %v3618_v42 = vunpack.i.l.bf16 %v3617_v38 }
 0xc40   : > { %3679 = vpow2.f32 %v2166_v37 }
 0xc41   : > { %2211 = vmatpush.msra.mxu2 %v3618_v42  ;;  %2237 = vmatpush.msra.mxu3 %v3619_v39  ;;  %v2469_v39 = vld [vmem:[#allocation16 + $0x10] sm:$0xff] }
 0xc42   : > { %v2519_v42 = vld [vmem:[#allocation16 + $0x30] sm:$0xff] }
 0xc43   : > { %2323 = vmatpush.msrb.mxu2 %v2298_v3  ;;  %2387 = vmatpush.msrb.mxu3 %v2357_v9  ;;  %v2686_v9 = vld [vmem:[#allocation19 + $0x58] sm:$0xff] }
 0xc45   : > { %2388 = vmatpush.msrb.mxu3 %v2356_v14  ;;  %v2645_v14 = vld [vmem:[#allocation19 + $0x28] sm:$0xff] }
 0xc46   : > { %v3680_v43 = vpop.eup %3679 }
 0xc47   : > { %v2176_v45 = vsel %vm1175_vm3, %v3680_v43, 0.0  ;;  %2389 = vmatpush.msrb.mxu3 %v2355_v15  ;;  %v2684_v15 = vld [vmem:[#allocation19 + $0x48] sm:$0xff] }
 0xc48   : > { %2177 = vadd.xlane.f32.xlu1 %v2176_v45  ;;  %v2596_v45 = vld [vmem:[#allocation19 + $0x10] sm:$0xff] }
 0xc49   : > { %2390 = vmatpush.msrb.mxu3 %v2354_v12  ;;  %v2644_v12 = vld [vmem:[#allocation19 + $0x20] sm:$0xff] }
 0xc50   : > { %2268 = vrot.lane.b32.xlu2 %v4818_v4, %s4231_s8  ;;  %v2297_v4 = vld [vmem:[#allocation10 + $0x50] sm:$0xff] }
 0xc51   : > { %2324 = vmatpush.msrb.mxu2 %v2297_v4 }
 0xc53   : > { %2325 = vmatpush.msrb.mxu2 %v2296_v5  ;;  %v4903_v5 = vld [vmem:[%s4561_s9 + $0x10] sm:$0xff] }
 0xc55   : > { %2326 = vmatpush.msrb.mxu2 %v2295_v6 }
 0xc61   : > { %2242 = vrot.lane.b32.xlu1 %v4814_v2, %s4231_s8  ;;  %s5254_s8 = sld [smem:[#allocation51_spill]] }
 0xc99   : > { %v2175_v46 = vpop.xlane.xlu2 %2174 }
 0xc9a   : > { %3681 = vrcp.f32 %v2175_v46  ;;  %v2468_v46 = vld [vmem:[#allocation16 + $0x8] sm:$0xff] }
 0xca0   : > { %v3682_v47 = vpop.eup %3681 }
 0xca1   : > { %v2187_v50 = vmul.f32 %v3682_v47, %v3674_v0  ;;  %v2172_v52 = vpop.xlane.xlu1 %2171  ;;  %v2518_v47 = vld [vmem:[#allocation16 + $0x28] sm:$0xff] }
 0xca2   : > { %3683 = vrcp.f32 %v2172_v52  ;;  %v2595_v52 = vld [vmem:[#allocation19 + $0x8] sm:$0xff] }
 0xca3   : > { %3376 = vmatmul.msk.f32.vlgmr.msra.gmra.mxu3 %vm1175_vm3, %v2187_v50  ;;  %v2557_v50 = vld [vmem:[#allocation16 + $0x48] sm:$0xff] }
 0xca4   : > { %2577 = vmatpush.msra.mxu3 %v2559_v29 }
 0xca8   : > { %v3684_v53 = vpop.eup %3683 }
 0xca9   : > { %v2186_v55 = vmul.f32 %v3684_v53, %v3676_v57  ;;  %v2470_v57 = vld [vmem:[#allocation16 + $0x18] sm:$0xff]  ;;  %v2467_v53 = vld [vmem:[#allocation16] sm:$0xff] }
 0xcab   : > { %3375 = vmatmul.msk.f32.vlgmr.msra.gmra.mxu2 %vm1175_vm3, %v2186_v55  ;;  %v2181_v56 = vpop.xlane.xlu2 %2180  ;;  %v2517_v55 = vld [vmem:[#allocation16 + $0x20] sm:$0xff] }
 0xcac   : > { %3685 = vrcp.f32 %v2181_v56  ;;  %2538 = vmatpush.msra.mxu2 %v2520_v28  ;;  %v2556_v56 = vld [vmem:[#allocation16 + $0x40] sm:$0xff] }
 0xcae   : > { %2539 = vmatpush.msra.mxu2 %v2519_v42 }
 0xcb0   : > { %2540 = vmatpush.msra.mxu2 %v2518_v47 }
 0xcb2   : > { %v3686_v59 = vpop.eup %3685  ;;  %2541 = vmatpush.msra.mxu2 %v2517_v55 }
 0xcb3   : > { %v2189_v60 = vmul.f32 %v3686_v59, %v3678_v33  ;;  %v2269_v61 = vpop.permute.xlu2 %2268  ;;  %v2594_v59 = vld [vmem:[#allocation19] sm:$0xff] }
 0xcb4   : > { %2289 = vmatpush.msrb.mxu1 %v2269_v61  ;;  %v4893_v61 = vld [vmem:[%s4561_s9 + $0x8] sm:$0xff] }
 0xcb5   : > { %3378 = vmatmul.msk.f32.vlgmr.msrb.gmra.mxu1 %vm1175_vm3, %v2189_v60  ;;  %v4888_v60 = vld [vmem:[%s4561_s9] sm:$0xff] }
 0xcb6   : > { %2499 = vmatpush.msra.mxu1 %v2470_v57 }
 0xcb8   : > { %2500 = vmatpush.msra.mxu1 %v2469_v39 }
 0xcba   : > { %2501 = vmatpush.msra.mxu1 %v2468_v46 }
 0xcbb   : > { %v2178_v62 = vpop.xlane.xlu1 %2177 }
 0xcbc   : > { %3687 = vrcp.f32 %v2178_v62  ;;  %2502 = vmatpush.msra.mxu1 %v2467_v53  ;;  %v3632_v62 = vld [vmem:[#allocation14 + $0x2] ss:$0 sm:$0xff]  ;;  %v4951_v53 = vld [vmem:[#allocation20 + $0x1] ss:$0 sm:$0xff] }
 0xcc2   : > { %v3688_v63 = vpop.eup %3687 }
 0xcc3   : > { %v2188_v1 = vmul.f32 %v3688_v63, %v3680_v43  ;;  %v2558_v43 = vld [vmem:[#allocation16 + $0x50] sm:$0xff] }
 0xcc4   : > { %2578 = vmatpush.msra.mxu3 %v2558_v43 }
 0xcc6   : > { %2579 = vmatpush.msra.mxu3 %v2557_v50  ;;  %v4949_v50 = vld [vmem:[#allocation17 + $0x1] ss:$0 sm:$0xff] }
 0xcc8   : > { %2580 = vmatpush.msra.mxu3 %v2556_v56 }
 0xcd3   : > { %v2243_v2 = vpop.permute.xlu1 %2242 }
 0xcd4   : > { %2263 = vmatpush.msra.mxu0 %v2243_v2 }
 0xcd5   : > { %3377 = vmatmul.msk.f32.vlgmr.msra.gmra.mxu0 %vm1175_vm3, %v2188_v1 }
 0xcd6   : > { %2437 = vmatpush.msrb.mxu0 %v2412_v21 }
 0xd26   : > { %v2239_v8 = vpop.f32.mrf.mxu3 }
 0xd2e   : > { %v2213_v7 = vpop.f32.mrf.mxu2 }
 0xd2f   : > { %3379 = vmatmul.msk.f32.vlgmr.msrb.gmra.mxu2 %vm1005_vm2, %v2213_v7  ;;  %v4911_v7 = vld [vmem:[%s4561_s9 + $0x18] sm:$0xff] }
 0xd30   : > { %2704 = vmatpush.msrb.mxu2 %v2686_v9 }
 0xd32   : > { %v2291_v11 = vpop.f32.mrf.mxu1 }
 0xd37   : > { %3380 = vmatmul.msk.f32.gmra.mxu2 %vm1005_vm2, %v2239_v8  ;;  %v2647_v8 = vld [vmem:[#allocation19 + $0x38] sm:$0xff] }
 0xd38   : > { %2665 = vmatpush.msrb.mxu1 %v2647_v8 }
 0xd52   : > { %v2265_v10 = vpop.f32.mrf.mxu0 }
 0xd53   : > { %3381 = vmatmul.msk.f32.gmra.mxu2 %vm1005_vm2, %v2265_v10  ;;  %v2646_v10 = vld [vmem:[#allocation19 + $0x30] sm:$0xff] }
 0xd54   : > { %2666 = vmatpush.msrb.mxu1 %v2646_v10 }
 0xd56   : > { %2667 = vmatpush.msrb.mxu1 %v2645_v14 }
 0xd58   : > { %2668 = vmatpush.msrb.mxu1 %v2644_v12  ;;  %v2909_v12 = vld [vmem:[%s5243_s28] sm:$0xff] }
 0xd5b   : > { %3382 = vmatmul.msk.f32.gmra.mxu2 %vm1005_vm2, %v2291_v11  ;;  %v2685_v11 = vld [vmem:[#allocation19 + $0x50] sm:$0xff] }
 0xd5c   : > { %2705 = vmatpush.msrb.mxu2 %v2685_v11  ;;  %v2910_v11 = vld [vmem:[%s5243_s28 + $0x8] sm:$0xff] }
 0xd5e   : > { %2706 = vmatpush.msrb.mxu2 %v2684_v15 }
 0xdb2   : > { %v2328_v16 = vpop.f32.mrf.mxu2 }
 0xdb3   : > { %v2340_v18 = vadd.f32 %v2328_v16, %v4793_v32 }
 0xdb5   : > { %v4861_v19 = vadd.f32 %v3630_v13, %v2340_v18 }
 0xdb7   : > { %3385 = vmatmul.msk.f32.vlgmr.msrb.gmra.mxu3 %vm1005_vm2, %v4861_v19 }
 0xdba   : > { %v2331_v20 = vpop.f32.mrf.mxu2 }
 0xdbb   : > { %v2341_v17 = vadd.f32 %v2331_v20, %v4797_v51  ;;  %v2411_v51 = vld [vmem:[#allocation13 + $0x50] sm:$0xff] }
 0xdbc   : > { %2438 = vmatpush.msrb.mxu0 %v2411_v51 }
 0xdbd   : > { %v4866_v40 = vadd.f32 %v3630_v13, %v2341_v17 }
 0xdbe   : > { %2439 = vmatpush.msrb.mxu0 %v2410_v24 }
 0xdbf   : > { %3386 = vmatmul.msk.f32.gmra.mxu3 %vm1005_vm2, %v4866_v40 }
 0xdc0   : > { %2440 = vmatpush.msrb.mxu0 %v2409_v30 }
 0xdc2   : > { %2626 = vmatpush.msra.mxu0 %v2597_v31 }
 0xdc4   : > { %2627 = vmatpush.msra.mxu0 %v2596_v45 }
 0xdc6   : > { %2628 = vmatpush.msra.mxu0 %v2595_v52 }
 0xdc8   : > { %2629 = vmatpush.msra.mxu0 %v2594_v59 }
 0xdd6   : > { %v2334_v48 = vpop.f32.mrf.mxu2 }
 0xdd7   : > { %v2342_v22 = vadd.f32 %v2334_v48, %v4801_v54  ;;  %v3631_v54 = vld [vmem:[%s5242_s1 + $0x2] ss:$0 sm:$0xff] }
 0xdd9   : > { %v4871_v23 = vadd.f32 %v3630_v13, %v2342_v22  ;;  %v3633_v22 = vld [vmem:[#allocation17] ss:$0 sm:$0xff] }
 0xddb   : > { %3387 = vmatmul.msk.f32.gmra.mxu3 %vm1005_vm2, %v4871_v23 }
 0xdde   : > { %v2337_v32 = vpop.f32.mrf.mxu2 }
 0xddf   : > { %v2343_v41 = vadd.f32 %v2337_v32, %v4805_v58 }
 0xde1   : > { %v4876_v44 = vadd.f32 %v3630_v13, %v2343_v41  ;;  %v2683_v13 = vld [vmem:[#allocation19 + $0x40] sm:$0xff] }
 0xde2   : > { %2707 = vmatpush.msrb.mxu2 %v2683_v13 }
 0xde3   : > { %3388 = vmatmul.msk.f32.gmra.mxu3 %vm1005_vm2, %v4876_v44 }
 0xe3a   : > { %v2392_v25 = vpop.f32.mrf.mxu3 }
 0xe3b   : > { %v2393_v0 = vadd.f32 %v3631_v54, %v2392_v25 }
 0xe3d   : > { %v2404_v26 = vmax.f32 %v2393_v0, 0.0 }
 0xe3f   : > { %3389 = vmatmul.msk.f32.vlgmr.msrb.gmra.mxu0 %vm1005_vm2, %v2404_v26 }
 0xe42   : > { %v2395_v58 = vpop.f32.mrf.mxu3 }
 0xe43   : > { %v2396_v27 = vadd.f32 %v3631_v54, %v2395_v58 }
 0xe45   : > { %v2405_v49 = vmax.f32 %v2396_v27, 0.0 }
 0xe47   : > { %3390 = vmatmul.msk.f32.gmra.mxu0 %vm1005_vm2, %v2405_v49 }
 0xe5e   : > { %v2398_v33 = vpop.f32.mrf.mxu3 }
 0xe5f   : > { %v2399_v34 = vadd.f32 %v3631_v54, %v2398_v33 }
 0xe61   : > { %v2406_v35 = vmax.f32 %v2399_v34, 0.0 }
 0xe63   : > { %3391 = vmatmul.msk.f32.gmra.mxu0 %vm1005_vm2, %v2406_v35 }
 0xe66   : > { %v2401_v36 = vpop.f32.mrf.mxu3 }
 0xe67   : > { %v2402_v37 = vadd.f32 %v3631_v54, %v2401_v36 }
 0xe69   : > { %v2407_v38 = vmax.f32 %v2402_v37, 0.0 }
 0xe6b   : > { %3392 = vmatmul.msk.f32.gmra.mxu0 %vm1005_vm2, %v2407_v38 }
 0xe73   : > { %3405 = vmatmul.msk.f32.vlgmr.msra.gmra.mxu0 %vm1005_vm2, %v4888_v60 }
 0xe7b   : > { %3406 = vmatmul.msk.f32.gmra.mxu0 %vm1005_vm2, %v4893_v61 }
 0xe83   : > { %3407 = vmatmul.msk.f32.gmra.mxu0 %vm1005_vm2, %v4903_v5 }
 0xe8b   : > { %3408 = vmatmul.msk.f32.gmra.mxu0 %vm1005_vm2, %v4911_v7 }
 0xebc   : > { %v2442_v63 = vpop.f32.mrf.mxu0 }
 0xebd   : > { %v2454_v1 = vadd.f32 %v2442_v63, %v4861_v19  ;;  %v2912_v63 = vld [vmem:[%s5243_s28 + $0x18] sm:$0xff] }
 0xebe   : > { %2941 = vmatpush.msrb.mxu3 %v2912_v63 }
 0xebf   : > { %v2463_v2 = vadd.f32 %v3632_v62, %v2454_v1 }
 0xec1   : > { %3393 = vmatmul.msk.f32.vlgmr.msra.gmra.mxu1 %vm1005_vm2, %v2463_v2  ;;  %3397 = vmatmul.msk.f32.vlgmr.msra.gmra.mxu2 %vm1005_vm2, %v2463_v2 }
 0xec2   : > { %3401 = vmatmul.msk.f32.vlgmr.msra.gmra.mxu3 %vm1005_vm2, %v2463_v2 }
 0xec4   : > { %v2445_v3 = vpop.f32.mrf.mxu0 }
 0xec5   : > { %v2455_v4 = vadd.f32 %v2445_v3, %v4866_v40 }
 0xec7   : > { %v2464_v6 = vadd.f32 %v3632_v62, %v2455_v4 }
 0xec9   : > { %3394 = vmatmul.msk.f32.gmra.mxu1 %vm1005_vm2, %v2464_v6  ;;  %3398 = vmatmul.msk.f32.gmra.mxu2 %vm1005_vm2, %v2464_v6 }
 0xeca   : > { %3402 = vmatmul.msk.f32.gmra.mxu3 %vm1005_vm2, %v2464_v6  ;;  %v2911_v6 = vld [vmem:[%s5243_s28 + $0x10] sm:$0xff] }
 0xecb   : > { %2942 = vmatpush.msrb.mxu3 %v2911_v6 }
 0xecd   : > { %2943 = vmatpush.msrb.mxu3 %v2910_v11 }
 0xecf   : > { %2944 = vmatpush.msrb.mxu3 %v2909_v12 }
 0xee0   : > { %v2448_v16 = vpop.f32.mrf.mxu0 }
 0xee1   : > { %v2456_v18 = vadd.f32 %v2448_v16, %v4871_v23  ;;  %v3634_v23 = vld [vmem:[#allocation20] ss:$0 sm:$0xff] }
 0xee3   : > { %v2465_v19 = vadd.f32 %v3632_v62, %v2456_v18 }
 0xee5   : > { %3395 = vmatmul.msk.f32.gmra.mxu1 %vm1005_vm2, %v2465_v19  ;;  %3399 = vmatmul.msk.f32.gmra.mxu2 %vm1005_vm2, %v2465_v19 }
 0xee6   : > { %3403 = vmatmul.msk.f32.gmra.mxu3 %vm1005_vm2, %v2465_v19 }
 0xee8   : > { %v2451_v20 = vpop.f32.mrf.mxu0 }
 0xee9   : > { %v2457_v17 = vadd.f32 %v2451_v20, %v4876_v44 }
 0xeeb   : > { %v2466_v40 = vadd.f32 %v3632_v62, %v2457_v17 }
 0xeed   : > { %3396 = vmatmul.msk.f32.gmra.mxu1 %vm1005_vm2, %v2466_v40  ;;  %3400 = vmatmul.msk.f32.gmra.mxu2 %vm1005_vm2, %v2466_v40 }
 0xeee   : > { %3404 = vmatmul.msk.f32.gmra.mxu3 %vm1005_vm2, %v2466_v40 }
 0xef0   : > { %v2631_v48 = vpop.f32.mrf.mxu0 }
 0xef1   : > { %v2632_v41 = vadd.f32 %v3634_v23, %v2631_v48 }
 0xef5   : > { %3409 = vmatmul.msk.f32.vlgmr.msrb.gmra.mxu1 %vm1005_vm2, %v4888_v60  ;;  %3413 = vmatmul.msk.f32.vlgmr.msrb.gmra.mxu2 %vm1005_vm2, %v4888_v60 }
 0xef8   : > { %v2634_v51 = vpop.f32.mrf.mxu0 }
 0xef9   : > { %v2635_v54 = vadd.f32 %v3634_v23, %v2634_v51 }
 0xefd   : > { %3410 = vmatmul.msk.f32.gmra.mxu1 %vm1005_vm2, %v4893_v61  ;;  %3414 = vmatmul.msk.f32.gmra.mxu2 %vm1005_vm2, %v4893_v61 }
 0xf00   : > { %v2637_v27 = vpop.f32.mrf.mxu0 }
 0xf01   : > { %v2638_v28 = vadd.f32 %v3634_v23, %v2637_v27 }
 0xf05   : > { %3411 = vmatmul.msk.f32.gmra.mxu1 %vm1005_vm2, %v4903_v5  ;;  %3415 = vmatmul.msk.f32.gmra.mxu2 %vm1005_vm2, %v4903_v5 }
 0xf08   : > { %v2640_v36 = vpop.f32.mrf.mxu0 }
 0xf09   : > { %v2641_v42 = vadd.f32 %v3634_v23, %v2640_v36 }
 0xf0d   : > { %3412 = vmatmul.msk.f32.gmra.mxu1 %vm1005_vm2, %v4911_v7  ;;  %3416 = vmatmul.msk.f32.gmra.mxu2 %vm1005_vm2, %v4911_v7 }
 0xf3e   : > { %v2504_v21 = vpop.f32.mrf.mxu1 }
 0xf3f   : > { %v2505_v32 = vadd.f32 %v3633_v22, %v2504_v21 }
 0xf41   : > { %v2721_v24 = vadd.f32 %v2632_v41, %v2505_v32  ;;  %v4987_v32 = vld [vmem:[#allocation20 + $0x2] ss:$0 sm:$0xff] }
 0xf43   : > { %v3417_v0 = vmul.f32 -1.442695, %v2721_v24 }
 0xf44   : > { %v2543_v25 = vpop.f32.mrf.mxu2 }
 0xf45   : > { %3689 = vpow2.f32 %v3417_v0  ;;  %v2544_v2 = vadd.f32 %v4949_v50, %v2543_v25  ;;  %v2582_v21 = vpop.f32.mrf.mxu3 }
 0xf46   : > { %v2507_v44 = vpop.f32.mrf.mxu1 }
 0xf47   : > { %v2508_v30 = vadd.f32 %v3633_v22, %v2507_v44 }
 0xf49   : > { %v2722_v26 = vadd.f32 %v2635_v54, %v2508_v30 }
 0xf4b   : > { %v3418_v58 = vmul.f32 -1.442695, %v2722_v26  ;;  %v3690_v57 = vpop.eup %3689 }
 0xf4c   : > { %v2546_v49 = vpop.f32.mrf.mxu2  ;;  %v4939_v33 = vadd.f32 1.0, %v3690_v57  ;;  %v5009_v57 = vld [vmem:[#allocation17 + $0x2] ss:$0 sm:$0xff] }
 0xf4d   : > { %3691 = vpow2.f32 %v3418_v58  ;;  %v2547_v20 = vadd.f32 %v4949_v50, %v2546_v49 }
 0xf4e   : > { %3693 = vrcp.f32 %v4939_v33  ;;  %vm2746_vm5 = vweird.f32 %v4939_v33  ;;  %v2752_v51 = vand.u32 2147483648, %v4939_v33  ;;  %v2750_v25 = vand.u32 2147483647, %v4939_v33 }
 0xf50   : > { %vm2751_vm8 = vcmp.eq.f32.partialorder %v2750_v25, 8.507059e+37 }
 0xf53   : > { %v3692_v35 = vpop.eup %3691 }
 0xf54   : > { %v4944_v39 = vadd.f32 1.0, %v3692_v35  ;;  %v4947_v47 = vpop.eup %3693 }
 0xf55   : > { %v2742_v59 = vmul.f32 %v4947_v47, %v4939_v33  ;;  %vm2747_vm4 = vweird.f32 %v4947_v47 }
 0xf56   : > { %vm4995_vm6 = vmor %vm2746_vm5, %vm2747_vm4  ;;  %v2767_v33 = vand.u32 2147483648, %v4944_v39  ;;  %vm2761_vm9 = vweird.f32 %v4944_v39  ;;  %v2765_v35 = vand.u32 2147483647, %v4944_v39 }
 0xf57   : > { %v2743_v9 = vsub.f32 1.0, %v2742_v59 }
 0xf58   : > { %v2768_v59 = vor.u32 1.1754944e-38, %v2767_v33  ;;  %vm2766_vm11 = vcmp.eq.f32.partialorder %v2765_v35, 8.507059e+37 }
 0xf59   : > { %v2744_v16 = vmul.f32 %v4947_v47, %v2743_v9 }
 0xf62   : > { %v2510_v29 = vpop.f32.mrf.mxu1 }
 0xf63   : > { %v2511_v31 = vadd.f32 %v3633_v22, %v2510_v29  ;;  %v2753_v29 = vor.u32 1.1754944e-38, %v2752_v51 }
 0xf65   : > { %v2723_v34 = vadd.f32 %v2638_v28, %v2511_v31 }
 0xf67   : > { %v3419_v37 = vmul.f32 -1.442695, %v2723_v34 }
 0xf68   : > { %v4942_v38 = vpop.f32.mrf.mxu2 }
 0xf69   : > { %3695 = vpow2.f32 %v3419_v37  ;;  %v2550_v28 = vadd.f32 %v4949_v50, %v4942_v38 }
 0xf6a   : > { %v2513_v43 = vpop.f32.mrf.mxu1  ;;  %3697 = vrcp.f32 %v4944_v39 }
 0xf6b   : > { %v2514_v45 = vadd.f32 %v3633_v22, %v2513_v43  ;;  %v2745_v22 = vadd.f32 %v4947_v47, %v2744_v16 }
 0xf6d   : > { %v2724_v46 = vadd.f32 %v2641_v42, %v2514_v45  ;;  %v2749_v26 = vsel %vm4995_vm6, %v4947_v47, %v2745_v22  ;;  %v2585_v45 = vpop.f32.mrf.mxu3 }
 0xf6e   : > { %v2754_v42 = vsel %vm2751_vm8, %v2753_v29, %v2749_v26  ;;  %v2586_v6 = vadd.f32 %v5009_v57, %v2585_v45 }
 0xf6f   : > { %v3420_v52 = vmul.f32 -1.442695, %v2724_v46  ;;  %v3696_v55 = vpop.eup %3695 }
 0xf70   : > { %v4953_v56 = vpop.f32.mrf.mxu2  ;;  %v4960_v1 = vpop.eup %3697  ;;  %v4963_v3 = vadd.f32 1.0, %v3696_v55  ;;  %v2583_v55 = vadd.f32 %v5009_v57, %v2582_v21 }
 0xf71   : > { %3699 = vpow2.f32 %v3420_v52  ;;  %v2757_v10 = vmul.f32 %v4960_v1, %v4944_v39  ;;  %vm2762_vm7 = vweird.f32 %v4960_v1 }
 0xf72   : > { %v2670_v62 = vpop.f32.mrf.mxu1  ;;  %3701 = vrcp.f32 %v4963_v3  ;;  %vm5019_vm10 = vmor %vm2761_vm9, %vm2762_vm7  ;;  %v2780_v11 = vand.u32 2147483647, %v4963_v3  ;;  %v2782_v12 = vand.u32 2147483648, %v4963_v3  ;;  %vm2776_vm14 = vweird.f32 %v4963_v3 }
 0xf73   : > { %v2671_v4 = vadd.f32 %v4951_v53, %v2670_v62  ;;  %v2758_v19 = vsub.f32 1.0, %v2757_v10 }
 0xf74   : > { %vm5046_vm15 = vcmp.eq.f32.partialorder %v2780_v11, 8.507059e+37 }
 0xf75   : > { %v2801_v8 = vadd.f32 %v2671_v4, %v2544_v2  ;;  %v2759_v41 = vmul.f32 %v4960_v1, %v2758_v19  ;;  %v2588_v29 = vpop.f32.mrf.mxu3 }
 0xf77   : > { %v3421_v14 = vmul.f32 -1.442695, %v2801_v8  ;;  %v3700_v15 = vpop.eup %3699  ;;  %v2760_v27 = vadd.f32 %v4960_v1, %v2759_v41 }
 0xf78   : > { %v2709_v13 = vpop.f32.mrf.mxu2  ;;  %v4980_v17 = vadd.f32 1.0, %v3700_v15  ;;  %v4983_v48 = vpop.eup %3701  ;;  %v2553_v15 = vadd.f32 %v4949_v50, %v4953_v56 }
 0xf79   : > { %3703 = vpow2.f32 %v3421_v14  ;;  %v2772_v0 = vmul.f32 %v4983_v48, %v4963_v3  ;;  %v2710_v58 = vadd.f32 %v4987_v32, %v2709_v13  ;;  %v2764_v47 = vsel %vm5019_vm10, %v4960_v1, %v2760_v27 }
 0xf7a   : > { %v2673_v18 = vpop.f32.mrf.mxu1  ;;  %3705 = vrcp.f32 %v4980_v17  ;;  %v2769_v9 = vsel %vm2766_vm11, %v2768_v59, %v2764_v47  ;;  %vm2777_vm12 = vweird.f32 %v4983_v48  ;;  %vm2791_vm7 = vweird.f32 %v4980_v17 }
 0xf7b   : > { %v2674_v40 = vadd.f32 %v4951_v53, %v2673_v18  ;;  %v2773_v36 = vsub.f32 1.0, %v2772_v0  ;;  %v2881_v46 = vmul.f32 %v2754_v42, %v2710_v58  ;;  %vm5050_vm0 = vmor %vm2776_vm14, %vm2777_vm12 }
 0xf7d   : > { %v2802_v23 = vadd.f32 %v2674_v40, %v2547_v20  ;;  %v2774_v2 = vmul.f32 %v4983_v48, %v2773_v36  ;;  %v2885_v1 = vadd.f32 %v2881_v46, %v2583_v55 }
 0xf7f   : > { %v3704_v44 = vpop.eup %3703  ;;  %v3422_v24 = vmul.f32 -1.442695, %v2802_v23  ;;  %v2775_v18 = vadd.f32 %v4983_v48, %v2774_v2 }
 0xf80   : > { %v4993_v30 = vadd.f32 1.0, %v3704_v44  ;;  %v2712_v31 = vpop.f32.mrf.mxu2  ;;  %v5017_v37 = vpop.eup %3705  ;;  %v2783_v44 = vor.u32 1.1754944e-38, %v2782_v12 }
 0xf81   : > { %3707 = vpow2.f32 %v3422_v24  ;;  %v2787_v4 = vmul.f32 %v5017_v37, %v4980_v17  ;;  %v2713_v10 = vadd.f32 %v4987_v32, %v2712_v31  ;;  %v2779_v3 = vsel %vm5050_vm0, %v4983_v48, %v2775_v18 }
 0xf82   : > { %3709 = vrcp.f32 %v4993_v30  ;;  %v2676_v49 = vpop.f32.mrf.mxu1  ;;  %v2832_v20 = vand.u32 2147483648, %v4993_v30  ;;  %v2830_v23 = vand.u32 2147483647, %v4993_v30  ;;  %vm2826_vm1 = vweird.f32 %v4993_v30 }
 0xf83   : > { %v2677_v34 = vadd.f32 %v4951_v53, %v2676_v49  ;;  %v2788_v19 = vsub.f32 1.0, %v2787_v4  ;;  %v2882_v50 = vmul.f32 %v2769_v9, %v2713_v10  ;;  %v2784_v48 = vsel %vm5046_vm15, %v2783_v44, %v2779_v3 }
 0xf84   : > { %v2833_v26 = vor.u32 1.1754944e-38, %v2832_v20  ;;  %vm2831_vm4 = vcmp.eq.f32.partialorder %v2830_v23, 8.507059e+37  ;;  %v2797_v31 = vand.u32 2147483648, %v4980_v17  ;;  %vm2792_vm5 = vweird.f32 %v5017_v37 }
 0xf85   : > { %v2803_v38 = vadd.f32 %v2677_v34, %v2550_v28  ;;  %v2789_v0 = vmul.f32 %v5017_v37, %v2788_v19  ;;  %v2886_v49 = vadd.f32 %v2882_v50, %v2586_v6  ;;  %vm5074_vm8 = vmor %vm2791_vm7, %vm2792_vm5  ;;  %v2591_v19 = vpop.f32.mrf.mxu3  ;;  %vm3028_vm7 = vcmask 392192  }
 0xf87   : > { %v3708_v52 = vpop.eup %3707  ;;  %v3423_v39 = vmul.f32 -1.442695, %v2803_v38  ;;  %v2790_v36 = vadd.f32 %v5017_v37, %v2789_v0 }
 0xf88   : > { %v3710_v62 = vpop.eup %3709  ;;  %v5027_v63 = vadd.f32 1.0, %v3708_v52  ;;  %v2715_v40 = vpop.f32.mrf.mxu2 }
 0xf89   : > { %v2822_v8 = vmul.f32 %v3710_v62, %v4993_v30  ;;  %3711 = vpow2.f32 %v3423_v39  ;;  %vm2827_vm13 = vweird.f32 %v3710_v62  ;;  %v2716_v30 = vadd.f32 %v4987_v32, %v2715_v40 }
 0xf8a   : > { %3713 = vrcp.f32 %v5027_v63  ;;  %v2679_v14 = vpop.f32.mrf.mxu1  ;;  %vm2828_vm3 = vmor %vm2826_vm1, %vm2827_vm13  ;;  %v2845_v42 = vand.u32 2147483647, %v5027_v63  ;;  %v2847_v43 = vand.u32 2147483648, %v5027_v63  ;;  %v2795_v39 = vand.u32 2147483647, %v4980_v17 }
 0xf8b   : > { %v2680_v13 = vadd.f32 %v4951_v53, %v2679_v14  ;;  %v2823_v16 = vsub.f32 1.0, %v2822_v8  ;;  %3715 = vtanh.f32 %v2885_v1  ;;  %v2883_v47 = vmul.f32 %v2784_v48, %v2716_v30 }
 0xf8c   : > { %vm2841_vm9 = vweird.f32 %v5027_v63  ;;  %v2798_v8 = vor.u32 1.1754944e-38, %v2797_v31  ;;  %v2848_v9 = vor.u32 1.1754944e-38, %v2847_v43  ;;  %v2794_v10 = vsel %vm5074_vm8, %v5017_v37, %v2790_v36  ;;  %v2964_v36 = vld [vmem:[%s5254_s8 + $0x10] sm:$0xff]  ;;  %v3639_v43 = vld [vmem:[#allocation22] ss:$0 sm:$0xff] }
 0xf8d   : > { %v2804_v21 = vadd.f32 %v2680_v13, %v2553_v15  ;;  %v2824_v22 = vmul.f32 %v3710_v62, %v2823_v16  ;;  %vm2846_vm11 = vcmp.eq.f32.partialorder %v2845_v42, 8.507059e+37  ;;  %vm2796_vm12 = vcmp.eq.f32.partialorder %v2795_v39, 8.507059e+37  ;;  %v2963_v42 = vld [vmem:[%s5254_s8 + $0x8] sm:$0xff] }
 0xf8e   : > { %v2799_v16 = vsel %vm2796_vm12, %v2798_v8, %v2794_v10  ;;  %v2592_v53 = vadd.f32 %v5009_v57, %v2591_v19 }
 0xf8f   : > { %v3712_v56 = vpop.eup %3711  ;;  %v3424_v51 = vmul.f32 -1.442695, %v2804_v21  ;;  %v2825_v24 = vadd.f32 %v3710_v62, %v2824_v22 }
 0xf90   : > { %v3714_v54 = vpop.eup %3713  ;;  %v5055_v25 = vadd.f32 1.0, %v3712_v56  ;;  %v2718_v55 = vpop.f32.mrf.mxu2 }
 0xf91   : > { %v2837_v58 = vmul.f32 %v3714_v54, %v5027_v63  ;;  %3717 = vpow2.f32 %v3424_v51  ;;  %v2829_v27 = vsel %vm2828_vm3, %v3710_v62, %v2825_v24  ;;  %v3716_v35 = vpop.eup %3715  ;;  %vm2842_vm6 = vweird.f32 %v3714_v54 }
 0xf92   : > { %3719 = vrcp.f32 %v5055_v25  ;;  %v2834_v28 = vsel %vm2831_vm4, %v2833_v26, %v2829_v27  ;;  %vm2843_vm10 = vmor %vm2841_vm9, %vm2842_vm6  ;;  %v2719_v11 = vadd.f32 %v4987_v32, %v2718_v55  ;;  %v2860_v18 = vand.u32 2147483647, %v5055_v25 }
 0xf93   : > { %v2893_v33 = vsub.f32 1.0, %v2834_v28  ;;  %v2838_v34 = vsub.f32 1.0, %v2837_v58  ;;  %v2901_v45 = vmul.f32 %v2834_v28, %v4888_v60  ;;  %3721 = vtanh.f32 %v2886_v49 }
 0xf94   : > { %v2589_v60 = vadd.f32 %v5009_v57, %v2588_v29  ;;  %v2862_v37 = vand.u32 2147483648, %v5055_v25  ;;  %v2884_v22 = vmul.f32 %v2799_v16, %v2719_v11  ;;  %vm2856_vm14 = vweird.f32 %v5055_v25 }
 0xf95   : > { %v2897_v38 = vmul.f32 %v3716_v35, %v2893_v33  ;;  %v2839_v46 = vmul.f32 %v3714_v54, %v2838_v34  ;;  %vm2861_vm0 = vcmp.eq.f32.partialorder %v2860_v18, 8.507059e+37  ;;  %v2965_v35 = vld [vmem:[%s5254_s8 + $0x18] sm:$0xff]  ;;  %vm3023_vm6 = vcmask 130048  }
 0xf96   : > { %v2887_v63 = vadd.f32 %v2883_v47, %v2589_v60  ;;  %v2863_v56 = vor.u32 1.1754944e-38, %v2862_v37  ;;  %2994 = vmatpush.msrb.mxu0 %v2965_v35 }
 0xf97   : > { %v3718_v52 = vpop.eup %3717  ;;  %v2905_v62 = vadd.f32 %v2901_v45, %v2897_v38  ;;  %v2840_v2 = vadd.f32 %v3714_v54, %v2839_v46 }
 0xf98   : > { %v3720_v4 = vpop.eup %3719  ;;  %v2820_v6 = vadd.f32 1.0, %v3718_v52  ;;  %2995 = vmatpush.msrb.mxu0 %v2964_v36 }
 0xf99   : > { %v2852_v1 = vmul.f32 %v3720_v4, %v5055_v25  ;;  %3011 = vrot.lane.b32.xlu0 %v2905_v62, %s4232_s13  ;;  %3425 = vmatmul.msk.f32.vlgmr.msrb.gmra.mxu3 %vm1005_vm2, %v2905_v62  ;;  %v2844_v17 = vsel %vm2843_vm10, %v3714_v54, %v2840_v2  ;;  %v3722_v13 = vpop.eup %3721  ;;  %vm2857_vm13 = vweird.f32 %v3720_v4 }
 0xf9a   : > { %3723 = vrcp.f32 %v2820_v6  ;;  %v2849_v14 = vsel %vm2846_vm11, %v2848_v9, %v2844_v17  ;;  %vm2858_vm15 = vmor %vm2856_vm14, %vm2857_vm13  ;;  %v2875_v0 = vand.u32 2147483647, %v2820_v6  ;;  %v2877_v26 = vand.u32 2147483648, %v2820_v6  ;;  %2996 = vmatpush.msrb.mxu0 %v2963_v42 }
 0xf9b   : > { %v2894_v15 = vsub.f32 1.0, %v2849_v14  ;;  %v2853_v12 = vsub.f32 1.0, %v2852_v1  ;;  %v2902_v40 = vmul.f32 %v2849_v14, %v4893_v61  ;;  %3725 = vtanh.f32 %v2887_v63 }
 0xf9c   : > { %v2888_v61 = vadd.f32 %v2884_v22, %v2592_v53  ;;  %vm2871_vm3 = vweird.f32 %v2820_v6  ;;  %v2878_v30 = vor.u32 1.1754944e-38, %v2877_v26  ;;  %vm2876_vm5 = vcmp.eq.f32.partialorder %v2875_v0, 8.507059e+37 }
 0xf9d   : > { %v2898_v20 = vmul.f32 %v3722_v13, %v2894_v15  ;;  %v2854_v21 = vmul.f32 %v3720_v4, %v2853_v12 }
 0xf9e   : > { %3727 = vtanh.f32 %v2888_v61 }
 0xf9f   : > { %v2906_v23 = vadd.f32 %v2902_v40, %v2898_v20  ;;  %v2855_v32 = vadd.f32 %v3720_v4, %v2854_v21 }
 0xfa0   : > { %v3724_v50 = vpop.eup %3723 }
 0xfa1   : > { %v2867_v41 = vmul.f32 %v3724_v50, %v2820_v6  ;;  %3013 = vrot.lane.b32.xlu0 %v2906_v23, %s4232_s13  ;;  %3426 = vmatmul.msk.f32.gmra.mxu3 %vm1005_vm2, %v2906_v23  ;;  %v2859_v44 = vsel %vm2858_vm15, %v3720_v4, %v2855_v32  ;;  %v3726_v3 = vpop.eup %3725  ;;  %vm2872_vm1 = vweird.f32 %v3724_v50  ;;  %v3640_v6 = vld [vmem:[%s5255_s10] ss:$0 sm:$0xff] }
 0xfa2   : > { %v2864_v51 = vsel %vm2861_vm0, %v2863_v56, %v2859_v44  ;;  %vm2873_vm4 = vmor %vm2871_vm3, %vm2872_vm1 }
 0xfa3   : > { %v2895_v24 = vsub.f32 1.0, %v2864_v51  ;;  %v2868_v54 = vsub.f32 1.0, %v2867_v41  ;;  %v2903_v58 = vmul.f32 %v2864_v51, %v4903_v5 }
 0xfa4   : > { %v3728_v31 = vpop.eup %3727 }
 0xfa5   : > { %v2899_v25 = vmul.f32 %v3726_v3, %v2895_v24  ;;  %v2869_v57 = vmul.f32 %v3724_v50, %v2868_v54 }
 0xfa7   : > { %v2907_v27 = vadd.f32 %v2903_v58, %v2899_v25  ;;  %v2870_v49 = vadd.f32 %v3724_v50, %v2869_v57 }
 0xfa9   : > { %3015 = vrot.lane.b32.xlu1 %v2907_v27, %s4232_s13  ;;  %3427 = vmatmul.msk.f32.gmra.mxu3 %vm1005_vm2, %v2907_v27  ;;  %v2874_v28 = vsel %vm2873_vm4, %v3724_v50, %v2870_v49 }
 0xfaa   : > { %v2879_v29 = vsel %vm2876_vm5, %v2878_v30, %v2874_v28 }
 0xfab   : > { %v2896_v48 = vsub.f32 1.0, %v2879_v29  ;;  %v2904_v5 = vmul.f32 %v2879_v29, %v4911_v7  ;;  %v2962_v7 = vld [vmem:[%s5254_s8] sm:$0xff] }
 0xfac   : > { %2997 = vmatpush.msrb.mxu0 %v2962_v7 }
 0xfad   : > { %v2900_v33 = vmul.f32 %v3728_v31, %v2896_v48 }
 0xfaf   : > { %v2908_v34 = vadd.f32 %v2904_v5, %v2900_v33 }
 0xfb1   : > { %3017 = vrot.lane.b32.xlu0 %v2908_v34, %s4232_s13  ;;  %3428 = vmatmul.msk.f32.gmra.mxu3 %vm1005_vm2, %v2908_v34  ;;  %s3440_s13 = sshll.u32 %s4369_s4, 5  ;;  %s3034_s4 = scalar_lea.sflag [#allocation4], %s4546_s7 }
 0xfb2   : > { %s3045_s21 = scalar_lea.hbm %s5256_s22, %s3440_s13 }
 0xfb3   : > { %s3048_s9 = sshll.u32 %s3045_s21, 4  ;;  %s3049_s9 = int_to_ptr.hbm [resolvable:$true] %s3048_s9 }
 0xfb4   : > { %s4133_s30 = sshra.s32 %s3049_s9, 4  ;;  %s4134_s30 = int_to_ptr.hbm [resolvable:$true] %s4133_s30 }
 0xfb5   : > { %s4135_s17 = scalar_lea.hbm %s4134_s30, 32  ;;  %p4140_p9 = scmp.lt.s32.totalorder %s4134_s30, %s5256_s22 }
 0xfb6   : > { %p4136_p3 = scmp.ne.s32.totalorder %s4134_s30, %s4135_s17  ;;  %p4141_p8 = scmp.lt.s32.totalorder %s4139_s19, %s4135_s17 }
 0xfb8   : > { %p4137_p13 = pnand %p4136_p3, %p4486_p0  ;;  %p4142_p5 = por %p4141_p8, %p4140_p9 }
 0xfba   : > { %p4138_p7 = pneg %p4137_p13 }
 0xfbc   : > { %p4143_p10 = pnand %p4142_p5, %p4138_p7 }
0x100b   : > { %v3012_v8 = vpop.permute.xlu0 %3011 }
0x1013   : > { %v3014_v11 = vpop.permute.xlu0 %3013 }
0x101b   : > { %v3016_v13 = vpop.permute.xlu1 %3015 }
0x101c   : > { %v2946_v38 = vpop.f32.mrf.mxu3 }
0x101d   : > { %v2947_v45 = vadd.f32 %v3639_v43, %v2946_v38 }
0x101f   : > { %v2958_v46 = vmax.f32 %v2947_v45, 0.0 }
0x1021   : > { %3429 = vmatmul.msk.f32.vlgmr.msrb.gmra.mxu0 %vm1005_vm2, %v2958_v46 }
0x1023   : > { %v3018_v19 = vpop.permute.xlu0 %3017 }
0x1024   : > { %v2949_v47 = vpop.f32.mrf.mxu3 }
0x1025   : > { %v2950_v52 = vadd.f32 %v3639_v43, %v2949_v47 }
0x1027   : > { %v2959_v55 = vmax.f32 %v2950_v52, 0.0 }
0x1029   : > { %3430 = vmatmul.msk.f32.gmra.mxu0 %vm1005_vm2, %v2959_v55 }
0x102c   : > { %v2952_v59 = vpop.f32.mrf.mxu3 }
0x102d   : > { %v2953_v39 = vadd.f32 %v3639_v43, %v2952_v59 }
0x102f   : > { %v2960_v62 = vmax.f32 %v2953_v39, 0.0 }
0x1031   : > { %3431 = vmatmul.msk.f32.gmra.mxu0 %vm1005_vm2, %v2960_v62 }
0x1034   : > { %v2955_v2 = vpop.f32.mrf.mxu3 }
0x1035   : > { %v2956_v4 = vadd.f32 %v3639_v43, %v2955_v2 }
0x1037   : > { %v2961_v60 = vmax.f32 %v2956_v4, 0.0 }
0x1039   : > { %3432 = vmatmul.msk.f32.gmra.mxu0 %vm1005_vm2, %v2961_v60 }
0x109e   : > { %v2999_v9 = vpop.f32.mrf.mxu0 }
0x109f   : > { %v3000_v1 = vadd.f32 %v3640_v6, %v2999_v9 }
0x10a1   : > { %v3024_v10 = vsel %vm3023_vm6, %v3000_v1, %v3012_v8 }
0x10a2   : > { %3029 = vst.msk [vmem:[%s911_s11] sm:$0xff] %vm3028_vm7, %v3024_v10 }
0x10a6   : > { %v3002_v17 = vpop.f32.mrf.mxu0 }
0x10a7   : > { %v3003_v63 = vadd.f32 %v3640_v6, %v3002_v17 }
0x10a9   : > { %v3025_v14 = vsel %vm3023_vm6, %v3003_v63, %v3014_v11 }
0x10aa   : > { %3030 = vst.msk [vmem:[%s911_s11 + $0x8] sm:$0xff] %vm3028_vm7, %v3025_v14 }
0x10ae   : > { %v3005_v15 = vpop.f32.mrf.mxu0 }
0x10af   : > { %v3006_v12 = vadd.f32 %v3640_v6, %v3005_v15 }
0x10b1   : > { %v3026_v16 = vsel %vm3023_vm6, %v3006_v12, %v3016_v13 }
0x10b2   : > { %3031 = vst.msk [vmem:[%s911_s11 + $0x10] sm:$0xff] %vm3028_vm7, %v3026_v16 }
0x10b6   : > { %v3008_v18 = vpop.f32.mrf.mxu0 }
0x10b7   : > { %v3009_v37 = vadd.f32 %v3640_v6, %v3008_v18 }
0x10b9   : > { %v3027_v20 = vsel %vm3023_vm6, %v3009_v37, %v3018_v19 }
0x10ba   : > { %3032 = vst.msk [vmem:[%s911_s11 + $0x18] sm:$0xff] %vm3028_vm7, %v3027_v20 }
0x10bb   : > { %4146 = shalt.err (!%p4143_p10)
}
0x10bc   : > { %s4233_s7 = smov 128   ;;  %s4234_s11 = smov 8  }
0x10bd   : > { %3492 = dma.vmem_to_hbm [thread:$0]  (%p4486_p0), %s3047_s16, 512, %s3049_s9, %s3034_s4, %s4233_s7, %s4233_s7, %s4234_s11  }
0x10be PF: > { %s3063_s12 = sand.u32 1, %s4201_s2   ;;  %p5257_p11 = scmp.ge.s32.totalorder %s4213_s27, 2 }
0x10bf   : > { %s3064_s5 = scalar_lea.sflag [#allocation4], %s3063_s12 }
0x10c0   : > { %p3536_p12 = pnand %p5257_p11, %p4492_p6 }
0x10c2   : > { %p3537_p2 = pneg %p3536_p12 }
0x10c4   : > { %4196 = dma.done.wait (%p3537_p2), %s3064_s5, 512  }
0x10c5   : > { %4198 = vsyncadd (%p3537_p2), %s3064_s5, 4294966784  ;;  %p42_p4 = scmp.ge.s32.totalorder %s4462_s29, 4   ;;  %s5258_s2 = smov %s4205_s25 }
0x10c6   : > { %s5259_s25 = smov %s4209_s26  ;;  %s5260_s26 = smov %s4474_s0 }
0x10c7   : > { %s5261_s27 = smov %s4462_s29  ;;  %44 = sbr.rel (!%p42_p4) target bundleno = 34 (0x22), region = 233 }
0x10cc   :  { %3070 = vsyncpa [#allocation3], 1 }
0x10cd   :  { %3072 = vsyncpa [#allocation3 + $0x1], 1 }
0x10ce   :  { %3073 = vsyncpa [#allocation6], 1 }
0x10cf   :  { %3075 = vsyncpa [#allocation6 + $0x1], 1 }
0x10d0   :  { %3076 = vsyncpa [#allocation9], 1 }
0x10d1   :  { %3077 = vsyncpa [#allocation12], 1 }
0x10d2   :  { %3078 = vsyncpa [#allocation15], 1 }
0x10d3   :  { %3079 = vsyncpa [#allocation18], 1 }
0x10d4   :  { %3080 = vsyncpa [#allocation21], 1 }
0x10d5   :  { %3081 = vsyncpa [#allocation4], 1 }
0x10d6   :  { %3083 = vsyncpa [#allocation4 + $0x1], 1 }

</bundles_post_ra>
